<compile_context>
chip_gen: v5e
topology: v5e:2x2
jax: 0.10.0
libtpu: 0.0.40
codegen_flags: <defaults>
</compile_context>

<pallas_src>
import functools

import jax
import jax.numpy as jnp
import numpy as np
from jax.experimental import pallas as pl
from jax.experimental.pallas import tpu as pltpu

P_DROP = 0.2


def _round_up(x, m):
    return (x + m - 1) // m * m


def _pad_to(a, axis, target):
    pad = target - a.shape[axis]
    if pad == 0:
        return a
    widths = [(0, 0)] * a.ndim
    widths[axis] = (0, pad)
    return jnp.pad(a, widths)


def _ffn_kernel(*refs, training):
    if training:
        x_ref, w1_ref, b1_ref, w2_ref, b2_ref, mask_ref, o_ref, acc_ref = refs
    else:
        x_ref, w1_ref, b1_ref, w2_ref, b2_ref, o_ref, acc_ref = refs
        mask_ref = None

    k = pl.program_id(1)

    @pl.when(k == 0)
    def _init():
        acc_ref[...] = jnp.zeros_like(acc_ref)

    # h_k = relu(x @ W1[:, hk] + b1[hk])   (MXU, f32 accumulation)
    h = jnp.dot(x_ref[...], w1_ref[...], preferred_element_type=jnp.float32)
    h = jnp.maximum(h + b1_ref[...], 0.0)
    # acc += h_k @ W2[hk, :]
    acc_ref[...] += jnp.dot(h.astype(w2_ref.dtype), w2_ref[...],
                            preferred_element_type=jnp.float32)

    @pl.when(k == pl.num_programs(1) - 1)
    def _finalize():
        y = acc_ref[...] + b2_ref[...]
        if training:
            # inverted dropout: mask already holds keep/(1-p) -> single multiply
            y = y * mask_ref[...]
        o_ref[...] = y.astype(o_ref.dtype)


def feedforward_pallas(x, w1, b1, w2, b2, *, training=False, dropout_key=None,
                       p_drop=P_DROP, tm=256, th=512,
                       compute_dtype=jnp.bfloat16):
    """x: (B, T, E).  w1: (E, 4E), b1: (4E,), w2: (4E, E), b2: (E,).

    Returns dropout(relu(x @ w1 + b1) @ w2 + b2) with PyTorch nn.Linear/Dropout
    semantics (dropout only applied when training=True).
    """
    B, T, E = x.shape
    H = w1.shape[1]
    N = B * T

    # --- tile sizes (MXU / (8,128) aligned) and exact zero-padding ---
    tm_eff = min(tm, _round_up(N, 8))        # row tile
    th_eff = min(th, _round_up(H, 128))      # hidden-chunk tile
    N_pad = _round_up(N, tm_eff)
    E_pad = _round_up(E, 128)                # lane-dense last dim
    H_pad = _round_up(H, th_eff)

    x2d = _pad_to(_pad_to(x.reshape(N, E), 1, E_pad), 0, N_pad).astype(compute_dtype)
    w1p = _pad_to(_pad_to(w1, 0, E_pad), 1, H_pad).astype(compute_dtype)
    w2p = _pad_to(_pad_to(w2, 0, H_pad), 1, E_pad).astype(compute_dtype)
    b1p = _pad_to(b1.reshape(1, H).astype(jnp.float32), 1, H_pad)
    b2p = _pad_to(b2.reshape(1, E).astype(jnp.float32), 1, E_pad)

    inputs = [x2d, w1p, b1p, w2p, b2p]
    in_specs = [
        pl.BlockSpec((tm_eff, E_pad), lambda i, k: (i, 0)),   # x rows (full E)
        pl.BlockSpec((E_pad, th_eff), lambda i, k: (0, k)),   # W1[:, hk]
        pl.BlockSpec((1, th_eff), lambda i, k: (0, k)),       # b1[hk]
        pl.BlockSpec((th_eff, E_pad), lambda i, k: (k, 0)),   # W2[hk, :]
        pl.BlockSpec((1, E_pad), lambda i, k: (0, 0)),        # b2
    ]

    if training:
        if dropout_key is None:
            raise ValueError("training=True requires dropout_key")
        # TODO(synk): on real TPU this mask could be generated in-kernel with
        # pltpu.prng_seed / prng_random_bits to save HBM traffic; it is kept as a
        # plain input because the TPU PRNG primitives have no interpret/CPU path.
        keep = jax.random.bernoulli(dropout_key, 1.0 - p_drop, (N, E))
        mask = keep.astype(jnp.float32) * (1.0 / (1.0 - p_drop))
        maskp = _pad_to(_pad_to(mask, 1, E_pad), 0, N_pad)
        inputs.append(maskp)
        in_specs.append(pl.BlockSpec((tm_eff, E_pad), lambda i, k: (i, 0)))

    n_row_tiles = N_pad // tm_eff
    n_h_tiles = H_pad // th_eff

    weight_bytes = sum(int(a.size) * a.dtype.itemsize for a in (w1p, b1p, w2p, b2p))
    bytes_accessed = int(
        x2d.size * x2d.dtype.itemsize
        + n_row_tiles * weight_bytes
        + N_pad * E_pad * np.dtype(x.dtype).itemsize
        + (inputs[5].size * inputs[5].dtype.itemsize if training else 0))
    flops = 4 * N_pad * E_pad * H_pad  # two matmuls

    kernel = functools.partial(_ffn_kernel, training=training)

    out = pl.pallas_call(
        kernel,
        out_shape=jax.ShapeDtypeStruct((N_pad, E_pad), x.dtype),
        grid_spec=pltpu.PrefetchScalarGridSpec(
            num_scalar_prefetch=0,
            grid=(n_row_tiles, n_h_tiles),
            in_specs=in_specs,
            out_specs=pl.BlockSpec((tm_eff, E_pad), lambda i, k: (i, 0)),
            scratch_shapes=[pltpu.VMEM((tm_eff, E_pad), jnp.float32)],
        ),
        compiler_params=pltpu.CompilerParams(
            # rows are independent (shardable across v7x's two TensorCores);
            # the hidden-chunk axis carries the accumulator -> "arbitrary".
            dimension_semantics=("parallel", "arbitrary")),
        cost_estimate=pl.CostEstimate(
            flops=flops, transcendentals=0, bytes_accessed=bytes_accessed),
    )(*inputs)

    return out[:N, :E].reshape(B, T, E)


def feedforward_ref(x, w1, b1, w2, b2):
    # pure-JAX f32 reference (eval mode: dropout is identity)
    h = jnp.maximum(x @ w1 + b1, 0.0)
    return h @ w2 + b2


if __name__ == "__main__":
    # small shapes consistent with the module: batch=2, seq=8, embedding_dim=516
    B, T, E = 2, 8, 516
    H = 4 * E  # 2064

    key = jax.random.PRNGKey(0)
    kx, k1, k2, k3, k4, kdrop = jax.random.split(key, 6)
    x = jax.random.normal(kx, (B, T, E), dtype=jnp.float32)
    # deterministic parameter init (PyTorch Linear-style uniform bounds)
    bound1 = 1.0 / np.sqrt(E)
    bound2 = 1.0 / np.sqrt(H)
    w1 = jax.random.uniform(k1, (E, H), jnp.float32, -bound1, bound1)
    b1 = jax.random.uniform(k2, (H,), jnp.float32, -bound1, bound1)
    w2 = jax.random.uniform(k3, (H, E), jnp.float32, -bound2, bound2)
    b2 = jax.random.uniform(k4, (E,), jnp.float32, -bound2, bound2)

    # eval-mode forward (dropout = identity), verified against pure-f32 reference
    # (bf16 MXU operands -> loosened tolerance).
    y = jax.block_until_ready(feedforward_pallas(x, w1, b1, w2, b2, training=False))
    y_ref = feedforward_ref(x, w1, b1, w2, b2)
    np.testing.assert_allclose(np.asarray(y), np.asarray(y_ref), rtol=2e-2, atol=2e-2)

    # training-mode forward: dropout via precomputed, pre-scaled keep-mask.
    y_train = jax.block_until_ready(
        feedforward_pallas(x, w1, b1, w2, b2, training=True, dropout_key=kdrop))
    keep = jax.random.bernoulli(kdrop, 1.0 - P_DROP, (B * T, E))
    mask = (keep.astype(jnp.float32) / (1.0 - P_DROP)).reshape(B, T, E)
    np.testing.assert_allclose(np.asarray(y_train), np.asarray(y * mask),
                               rtol=1e-5, atol=1e-5)

    print("KERNEL_OK")
</pallas_src>

<mosaic_0001>
module attributes {stable_mosaic.version = 11 : i64} {
  func.func @_ffn_kernel(%arg0: i32, %arg1: i32, %arg2: memref<16x640xbf16, #tpu.memory_space<vmem>>, %arg3: memref<640x512xbf16, #tpu.memory_space<vmem>>, %arg4: memref<1x512xf32, #tpu.memory_space<vmem>>, %arg5: memref<512x640xbf16, #tpu.memory_space<vmem>>, %arg6: memref<1x640xf32, #tpu.memory_space<vmem>>, %arg7: memref<16x640xf32, #tpu.memory_space<vmem>>, %arg8: memref<16x640xf32, #tpu.memory_space<vmem>>) attributes {dimension_semantics = [#tpu.dimension_semantics<parallel>, #tpu.dimension_semantics<arbitrary>], iteration_bounds = array<i64: 1, 5>, scalar_prefetch = 0 : i64, scratch_operands = 1 : i64, tpu.core_type = #tpu.core_type<tc>, window_params = [{transform_indices = @transform_0, window_bounds = array<i64: 16, 640>}, {transform_indices = @transform_1, window_bounds = array<i64: 640, 512>}, {transform_indices = @transform_2, window_bounds = array<i64: 1, 512>}, {transform_indices = @transform_3, window_bounds = array<i64: 512, 640>}, {pipeline_mode = #tpu.pipeline_mode<synchronous>, transform_indices = @transform_4, window_bounds = array<i64: 1, 640>}, {transform_indices = @transform_5, window_bounds = array<i64: 16, 640>}]} {
    %c0_i32 = arith.constant 0 : i32
    %0 = arith.cmpi eq, %arg1, %c0_i32 : i32
    %1 = arith.extui %0 : i1 to i32
    %c0_i32_0 = arith.constant 0 : i32
    %2 = arith.cmpi ne, %1, %c0_i32_0 : i32
    scf.if %2 {
      %cst_15 = arith.constant 0.000000e+00 : f32
      %20 = vector.broadcast %cst_15 : f32 to vector<16x640xf32>
      %c0_16 = arith.constant 0 : index
      %c0_17 = arith.constant 0 : index
      %21 = vector.load %arg8[%c0_16, %c0_17] : memref<16x640xf32, #tpu.memory_space<vmem>>, vector<16x640xf32>
      tpu.vector_store %arg8[%c0_16, %c0_17], %20 {strides = array<i32>} : memref<16x640xf32, #tpu.memory_space<vmem>>, vector<16x640xf32>,
    } else {
    }
    %c0 = arith.constant 0 : index
    %c0_1 = arith.constant 0 : index
    %3 = vector.load %arg2[%c0, %c0_1] : memref<16x640xbf16, #tpu.memory_space<vmem>>, vector<16x640xbf16>
    %c0_2 = arith.constant 0 : index
    %c0_3 = arith.constant 0 : index
    %4 = vector.load %arg3[%c0_2, %c0_3] : memref<640x512xbf16, #tpu.memory_space<vmem>>, vector<640x512xbf16>
    %cst = arith.constant dense<0.000000e+00> : vector<16x512xf32>
    %5 = tpu.matmul %3, %4, %cst {dimension_numbers = #tpu.dot_dimension_numbers<[1], [0], [0], [1], [0, 0, 1, 1], [], []>} : vector<16x640xbf16>, vector<640x512xbf16>, vector<16x512xf32> -> vector<16x512xf32>
    %c0_4 = arith.constant 0 : index
    %c0_5 = arith.constant 0 : index
    %6 = vector.load %arg4[%c0_4, %c0_5] : memref<1x512xf32, #tpu.memory_space<vmem>>, vector<1x512xf32>
    %7 = vector.broadcast %6 : vector<1x512xf32> to vector<16x512xf32>
    %8 = arith.addf %5, %7 : vector<16x512xf32>
    %cst_6 = arith.constant 0.000000e+00 : f32
    %9 = vector.broadcast %cst_6 : f32 to vector<16x512xf32>
    %10 = arith.maximumf %8, %9 : vector<16x512xf32>
    %c0_7 = arith.constant 0 : index
    %c0_8 = arith.constant 0 : index
    %11 = vector.load %arg8[%c0_7, %c0_8] : memref<16x640xf32, #tpu.memory_space<vmem>>, vector<16x640xf32>
    %12 = arith.truncf %10 : vector<16x512xf32> to vector<16x512xbf16>
    %c0_9 = arith.constant 0 : index
    %c0_10 = arith.constant 0 : index
    %13 = vector.load %arg5[%c0_9, %c0_10] : memref<512x640xbf16, #tpu.memory_space<vmem>>, vector<512x640xbf16>
    %cst_11 = arith.constant dense<0.000000e+00> : vector<16x640xf32>
    %14 = tpu.matmul %12, %13, %cst_11 {dimension_numbers = #tpu.dot_dimension_numbers<[1], [0], [0], [1], [0, 0, 1, 1], [], []>} : vector<16x512xbf16>, vector<512x640xbf16>, vector<16x640xf32> -> vector<16x640xf32>
    %15 = arith.addf %11, %14 : vector<16x640xf32>
    %c0_12 = arith.constant 0 : index
    %c0_13 = arith.constant 0 : index
    %16 = vector.load %arg8[%c0_12, %c0_13] : memref<16x640xf32, #tpu.memory_space<vmem>>, vector<16x640xf32>
    tpu.vector_store %arg8[%c0_12, %c0_13], %15 {strides = array<i32>} : memref<16x640xf32, #tpu.memory_space<vmem>>, vector<16x640xf32>,
    %c4_i32 = arith.constant 4 : i32
    %17 = arith.cmpi eq, %arg1, %c4_i32 : i32
    %18 = arith.extui %17 : i1 to i32
    %c0_i32_14 = arith.constant 0 : i32
    %19 = arith.cmpi ne, %18, %c0_i32_14 : i32
    scf.if %19 {
      %c0_15 = arith.constant 0 : index
      %c0_16 = arith.constant 0 : index
      %20 = vector.load %arg8[%c0_15, %c0_16] : memref<16x640xf32, #tpu.memory_space<vmem>>, vector<16x640xf32>
      %c0_17 = arith.constant 0 : index
      %c0_18 = arith.constant 0 : index
      %21 = vector.load %arg6[%c0_17, %c0_18] : memref<1x640xf32, #tpu.memory_space<vmem>>, vector<1x640xf32>
      %22 = vector.broadcast %21 : vector<1x640xf32> to vector<16x640xf32>
      %23 = arith.addf %20, %22 : vector<16x640xf32>
      %c0_19 = arith.constant 0 : index
      %c0_20 = arith.constant 0 : index
      %24 = vector.load %arg7[%c0_19, %c0_20] : memref<16x640xf32, #tpu.memory_space<vmem>>, vector<16x640xf32>
      tpu.vector_store %arg7[%c0_19, %c0_20], %23 {strides = array<i32>} : memref<16x640xf32, #tpu.memory_space<vmem>>, vector<16x640xf32>,
    } else {
    }
    return
  }
  func.func @transform_0(%arg0: i32, %arg1: i32) -> (i32, i32) {
    %c0_i32 = arith.constant 0 : i32
    %c0_i32_0 = arith.constant 0 : i32
    return %arg0, %c0_i32 : i32, i32
  }
  func.func @transform_1(%arg0: i32, %arg1: i32) -> (i32, i32) {
    %c0_i32 = arith.constant 0 : i32
    %c0_i32_0 = arith.constant 0 : i32
    return %c0_i32, %arg1 : i32, i32
  }
  func.func @transform_2(%arg0: i32, %arg1: i32) -> (i32, i32) {
    %c0_i32 = arith.constant 0 : i32
    %c0_i32_0 = arith.constant 0 : i32
    return %c0_i32, %arg1 : i32, i32
  }
  func.func @transform_3(%arg0: i32, %arg1: i32) -> (i32, i32) {
    %c0_i32 = arith.constant 0 : i32
    %c0_i32_0 = arith.constant 0 : i32
    return %arg1, %c0_i32 : i32, i32
  }
  func.func @transform_4(%arg0: i32, %arg1: i32) -> (i32, i32) {
    %c0_i32 = arith.constant 0 : i32
    %c0_i32_0 = arith.constant 0 : i32
    %c0_i32_1 = arith.constant 0 : i32
    return %c0_i32, %c0_i32_0 : i32, i32
  }
  func.func @transform_5(%arg0: i32, %arg1: i32) -> (i32, i32) {
    %c0_i32 = arith.constant 0 : i32
    %c0_i32_0 = arith.constant 0 : i32
    return %arg0, %c0_i32 : i32, i32
  }
}

</mosaic_0001>

<bundles_post_ra>
// kernel: tpu_custom_call.1
= control target key start
LH: loop header
LB: loop body
LE: loop exit
PB: predicated region body
PF: predicated region fallthrough
CT: control target
= control target key end

     0   :  { %s6117_s0 = inlined_call_operand.hbm [shape: bf16[16,640], index: 0, kind: input, shape index: {}]   ;;  %s6118_s1 = inlined_call_operand.hbm [shape: bf16[640,2560], index: 1, kind: input, shape index: {}]   ;;  %s6119_s2 = inlined_call_operand.hbm [shape: f32[1,2560], index: 2, kind: input, shape index: {}]   ;;  %s6120_s3 = inlined_call_operand.hbm [shape: bf16[2560,640], index: 3, kind: input, shape index: {}]   ;;  %s6121_s4 = inlined_call_operand.hbm [shape: f32[1,640], index: 4, kind: input, shape index: {}]   ;;  %s6122_s5 = inlined_call_operand.hbm [shape: f32[16,640], index: 5, kind: output, shape index: {}]  }
   0x1   :  { %6125 = sst [smem:[#allocation20_spill]] %s6118_s1 }
   0x2   :  { %6126 = sst [smem:[#allocation21_spill]] %s6121_s4 }
   0x3   :  { %6127 = sst [smem:[#allocation22_spill]] %s6122_s5 }
   0x4   :  { %10 = vsyncpa [#allocation4], 0 }
   0x5   :  { %11 = vsyncpa [#allocation7], 0 }
   0x6   :  { %13 = vsyncpa [#allocation7 + $0x1], 0 }
   0x7   :  { %14 = vsyncpa [#allocation10], 0 }
   0x8   :  { %16 = vsyncpa [#allocation10 + $0x1], 0 }
   0x9   :  { %17 = vsyncpa [#allocation5], 0  ;;  %s5244_s18 = smov 0   ;;  %s5246_s19 = smov 0  }
   0xa   :  { %s5248_s20 = smov 0   ;;  %s5250_s21 = smov 0  }
   0xb   :  { %s5252_s22 = smov 0   ;;  %s5254_s23 = smov 0  }
   0xc LB: > { %s5273_s24 = sadd.s32 4294967295, %s5201_s23   ;;  %s68_s25 = sadd.s32 1, %s5189_s20  ;;  %s5201_s23 = sphi %s5254_s23, %s23_s23   ;;  %s5197_s22 = sphi %s5252_s22, %s6145_s22   ;;  %s5193_s21 = sphi %s5250_s21, %s6144_s21   ;;  %s5189_s20 = sphi %s5248_s20, %s6143_s20   ;;  %s5185_s19 = sphi %s5246_s19, %s6142_s19   ;;  %s5181_s18 = sphi %s5244_s18, %s6141_s18  }
   0xd   : > { %p75_p0 = scmp.ne.s32.totalorder %s5189_s20, %s5185_s19  ;;  %p76_p1 = scmp.eq.s32.totalorder %s5201_s23, 0 }
   0xe   : > { %p81_p2 = scmp.ne.s32.totalorder %s5185_s19, %s5181_s18  ;;  %p82_p3 = scmp.eq.s32.totalorder %s5273_s24, 0 }
   0xf   : > { %p5281_p4 = por %p76_p1, %p75_p0  ;;  %p3205_p5 = scmp.ge.s32.totalorder %s5201_s23, 1 }
  0x10   : > { %p5288_p6 = por %p82_p3, %p81_p2  ;;  %p191_p7 = scmp.lt.s32.totalorder %s5201_s23, 6 }
  0x11   : > { %s6130_s4 = sld [smem:[#allocation21_spill]]  ;;  %s5203_s7 = smov [#allocation11]  }
  0x12   : > { %p5296_p8 = pnand %p3205_p5, %p191_p7  ;;  %s223_s8 = sshll.u32 %s5203_s7, 4  ;;  %s224_s8 = int_to_ptr.vmem [resolvable:$true] %s223_s8 }
  0x13   : > { %p4893_p10 = scmp.lt.s32.totalorder %s5201_s23, 5  ;;  %s32_s11 = sadd.s32 1, %s5197_s22 }
  0x14   : > { %p4874_p9 = pneg %p5296_p8  ;;  %p33_p13 = scmp.ge.s32.totalorder %s32_s11, 5 }
  0x15   : > { %p5311_p12 = pnand %p4893_p10, %p5281_p4  ;;  %s6124_s12 = sand.u32 1, %s5201_s23  }
  0x16   : > { %p5305_p11 = pnand %p4874_p9, %p82_p3  ;;  %s236_s13 = sand.u32 1, %s5189_s20  }
  0x17   : > { %s221_s30 = sshll.u32 %s6130_s4, 4  ;;  %s6147_s11 = smov (%p33_p13, %s32_s11), 0  ;;  %s222_s30 = int_to_ptr.hbm [resolvable:$true] %s221_s30 }
  0x18   : > { %4880 = dma.hbm_to_vmem [thread:$0]  (!%p5305_p11), %s222_s30, 80, %s224_s8, [#allocation10]  }
  0x19   : > { %6134 = sst [smem:[#allocation18_spill]] %s6147_s11  ;;  %s5322_s14 = smul.u32 1280, %s236_s13 }
  0x1a   : > { %s65_s15 = ssub.s32 %s5197_s22, %s6147_s11  ;;  %s4526_s16 = sshll.u32 %s5197_s22, 4 }
  0x1b   : > { %p66_p0 = scmp.eq.s32.totalorder %s65_s15, 0  ;;  %s6135_s1 = sld [smem:[#allocation20_spill]] }
  0x1c   : > { %s238_s28 = scalar_lea.vmem [#allocation6], %s5322_s14  ;;  %s235_s8 = scalar_lea.sflag [#allocation7], %s6124_s12 }
  0x1d   : > { %s246_s29 = sshll.u32 %s238_s28, 4  ;;  %s5204_s4 = smov 1280   ;;  %s247_s29 = int_to_ptr.vmem [resolvable:$true] %s246_s29 }
  0x1e   : > { %s5334_s30 = scalar_select %p66_p0, %s5189_s20, %s68_s25  }
  0x1f   : > { %s5205_s11 = smov 256   ;;  %s5206_s5 = smov 16  }
  0x20   : > { %6136 = sst [smem:[#allocation19_spill]] %s5334_s30  ;;  %s5207_s25 = smov [#allocation3]  }
  0x21   : > { %s243_s26 = scalar_lea.hbm %s6135_s1, %s4526_s16  ;;  %s206_s16 = sshll.u32 %s6117_s0, 4  ;;  %s207_s16 = int_to_ptr.hbm [resolvable:$true] %s206_s16 }
  0x22   : > { %s244_s7 = sshll.u32 %s243_s26, 4  ;;  %s208_s18 = sshll.u32 %s5207_s25, 4  ;;  %s245_s7 = int_to_ptr.hbm [resolvable:$true] %s244_s7  ;;  %s209_s18 = int_to_ptr.vmem [resolvable:$true] %s208_s18 }
  0x23   : > { %4884 = dma.hbm_to_vmem [thread:$0]  (!%p5311_p12), %s245_s7, 20480, %s247_s29, %s235_s8, %s5204_s4, %s5205_s11, %s5206_s5  }
  0x24   : > { %s3211_s26 = sshll.u32 %s236_s13, 2  ;;  %s5208_s28 = smov 320  }
  0x25   : > { %s5209_s1 = smov 20   ;;  %s3212_s12 = sshll.u32 %s5197_s22, 2 }
  0x26   : > { %4877 = dma.hbm_to_vmem [thread:$0]  (!%p5305_p11), %s207_s16, 640, %s209_s18, [#allocation4], %s5208_s28, %s5208_s28, %s5209_s1  }
  0x27   : > { %s264_s5 = scalar_lea.hbm %s6119_s2, %s3212_s12  ;;  %s260_s11 = scalar_lea.vmem [#allocation8], %s3211_s26 }
  0x28   : > { %s268_s29 = sshll.u32 %s260_s11, 4  ;;  %s266_s7 = sshll.u32 %s264_s5, 4  ;;  %s269_s29 = int_to_ptr.vmem [resolvable:$true] %s268_s29  ;;  %s267_s7 = int_to_ptr.hbm [resolvable:$true] %s266_s7 }
  0x29   : > { %4887 = dma.hbm_to_vmem [thread:$0]  (!%p5311_p12), %s267_s7, 64, %s269_s29, %s235_s8  }
  0x2a   : > { %s4854_s15 = smul.u32 1280, %s5197_s22  ;;  %s279_s13 = scalar_lea.vmem [#allocation9], %s5322_s14 }
  0x2b   : > { %s288_s17 = sshll.u32 %s279_s13, 4  ;;  %s6137_s30 = sand.u32 1, %s5201_s23   ;;  %s289_s17 = int_to_ptr.vmem [resolvable:$true] %s288_s17 }
  0x2c   : > { %s285_s16 = scalar_lea.hbm %s6120_s3, %s4854_s15  ;;  %s276_s4 = scalar_lea.sflag [#allocation10], %s6137_s30 }
  0x2d   : > { %s286_s18 = sshll.u32 %s285_s16, 4  ;;  %300 = sbr.rel (%p5296_p8) target bundleno = 657 (0x291), region = 40  ;;  %s287_s18 = int_to_ptr.hbm [resolvable:$true] %s286_s18 }
  0x2e   : > { %4890 = dma.hbm_to_vmem [thread:$0]  (!%p5311_p12), %s287_s18, 20480, %s289_s17, %s276_s4, %s5208_s28, %s5208_s28, %s5209_s1  }
  0x32   : > { %5160 = dma.done.wait (%p82_p3), [#allocation4], 640  }
  0x33   : > { %5162 = vsyncadd (%p82_p3), [#allocation4], 4294966656  ;;  %s307_s12 = sand.u32 1, %s5273_s24   ;;  %s309_s14 = sand.u32 1, %s5185_s19  }
  0x34   : > { %s4855_s8 = smul.u32 1280, %s309_s14  ;;  %s308_s26 = scalar_lea.sflag [#allocation7], %s307_s12 }
  0x36   : > { %s5368_s5 = scalar_lea.vmem [#allocation6], %s4855_s8 }
  0x37   : > { %5164 = dma.done.wait (%p5288_p6), %s308_s26, 20544  }
  0x38   : > { %5166 = vsyncadd (%p5288_p6), %s308_s26, 4294946752  ;;  %s5374_s1 = sshll.u32 %s309_s14, 2  ;;  %s328_s10 = scalar_lea.sflag [#allocation10], %s307_s12 }
  0x39   : > { %s321_s6 = scalar_lea.vmem [#allocation8], %s5374_s1  ;;  %s5377_s28 = scalar_lea.vmem [#allocation9], %s4855_s8 }
  0x3a   : > { %5168 = dma.done.wait (%p5288_p6), %s328_s10, 20480  }
  0x3b   : > { %5170 = vsyncadd (%p5288_p6), %s328_s10, 4294946816 }
  0x3c   : > { %5172 = dma.done.wait (%p82_p3), [#allocation10], 80  }
  0x3d   : > { %5174 = vsyncadd (%p82_p3), [#allocation10], 4294967216  ;;  %p3220_p1 = scmp.ne.s32.totalorder %s5193_s21, 0 }
  0x3f   : > { %377 = sbr.rel (%p3220_p1) target bundleno = 79 (0x4f), region = 64 }
  0x44   : > { %v5210_v0 = vmov 0.0  }
  0x45   : > { %378 = vst [vmem:[#allocation2 + $0x30] sm:$0xff] %v5210_v0 }
  0x46   : > { %379 = vst [vmem:[#allocation2] sm:$0xff] %v5210_v0 }
  0x47   : > { %380 = vst [vmem:[#allocation2 + $0x18] sm:$0xff] %v5210_v0 }
  0x48   : > { %381 = vst [vmem:[#allocation2 + $0x10] sm:$0xff] %v5210_v0 }
  0x49   : > { %382 = vst [vmem:[#allocation2 + $0x48] sm:$0xff] %v5210_v0 }
  0x4a   : > { %383 = vst [vmem:[#allocation2 + $0x28] sm:$0xff] %v5210_v0 }
  0x4b   : > { %384 = vst [vmem:[#allocation2 + $0x8] sm:$0xff] %v5210_v0 }
  0x4c   : > { %385 = vst [vmem:[#allocation2 + $0x20] sm:$0xff] %v5210_v0 }
  0x4d   : > { %386 = vst [vmem:[#allocation2 + $0x40] sm:$0xff] %v5210_v0 }
  0x4e   : > { %387 = vst [vmem:[#allocation2 + $0x38] sm:$0xff] %v5210_v0 }
  0x4f PF: > { %v3355_v1 = vld [vmem:[%s5368_s5 + $0xe0] sm:$0xf]  ;;  %v4562_v2 = vld [vmem:[%s5368_s5 + $0xec] sm:$0xf0]  ;;  %p4521_p2 = scmp.ne.s32.totalorder %s5193_s21, 4 }
  0x50   : > { %v3483_v3 = vld [vmem:[%s5368_s5 + $0x1e0] sm:$0xf]  ;;  %v3356_v4 = vor.u32 %v4562_v2, %v3355_v1  ;;  %v4594_v5 = vld [vmem:[%s5368_s5 + $0x1ec] sm:$0xf0] }
  0x51   : > { %v3611_v6 = vld [vmem:[%s5368_s5 + $0x2e0] sm:$0xf]  ;;  %v4626_v7 = vld [vmem:[%s5368_s5 + $0x2ec] sm:$0xf0]  ;;  %v3484_v8 = vor.u32 %v4594_v5, %v3483_v3 }
  0x52   : > { %v3612_v9 = vor.u32 %v4626_v7, %v3611_v6  ;;  %v3739_v10 = vld [vmem:[%s5368_s5 + $0x3e0] sm:$0xf]  ;;  %v4658_v11 = vld [vmem:[%s5368_s5 + $0x3ec] sm:$0xf0]  ;;  %1390 = vmatpush.bf16.msra.mxu0 %v3356_v4 }
  0x53   : > { %v3339_v12 = vld [vmem:[%s5368_s5 + $0xc0] sm:$0xf]  ;;  %v3740_v13 = vor.u32 %v4658_v11, %v3739_v10  ;;  %v4558_v14 = vld [vmem:[%s5368_s5 + $0xcc] sm:$0xf0]  ;;  %1404 = vmatpush.bf16.msra.mxu1 %v3484_v8 }
  0x54   : > { %v3467_v15 = vld [vmem:[%s5368_s5 + $0x1c0] sm:$0xf]  ;;  %v4590_v16 = vld [vmem:[%s5368_s5 + $0x1cc] sm:$0xf0]  ;;  %1418 = vmatpush.bf16.msra.mxu2 %v3612_v9  ;;  %v3340_v17 = vor.u32 %v4558_v14, %v3339_v12 }
  0x55   : > { %v3468_v18 = vor.u32 %v4590_v16, %v3467_v15  ;;  %v3595_v19 = vld [vmem:[%s5368_s5 + $0x2c0] sm:$0xf]  ;;  %v4622_v20 = vld [vmem:[%s5368_s5 + $0x2cc] sm:$0xf0]  ;;  %1432 = vmatpush.bf16.msra.mxu3 %v3740_v13 }
  0x56   : > { %v3723_v21 = vld [vmem:[%s5368_s5 + $0x3c0] sm:$0xf]  ;;  %v3596_v22 = vor.u32 %v4622_v20, %v3595_v19  ;;  %v4654_v23 = vld [vmem:[%s5368_s5 + $0x3cc] sm:$0xf0]  ;;  %1391 = vmatpush.bf16.msra.mxu0 %v3340_v17 }
  0x57   : > { %v3323_v24 = vld [vmem:[%s5368_s5 + $0xa0] sm:$0xf]  ;;  %v4554_v25 = vld [vmem:[%s5368_s5 + $0xac] sm:$0xf0]  ;;  %v3724_v26 = vor.u32 %v4654_v23, %v3723_v21  ;;  %1405 = vmatpush.bf16.msra.mxu1 %v3468_v18 }
  0x58   : > { %v3451_v27 = vld [vmem:[%s5368_s5 + $0x1a0] sm:$0xf]  ;;  %v4586_v28 = vld [vmem:[%s5368_s5 + $0x1ac] sm:$0xf0]  ;;  %v3324_v30 = vor.u32 %v4554_v25, %v3323_v24  ;;  %1419 = vmatpush.bf16.msra.mxu2 %v3596_v22 }
  0x59   : > { %v3579_v29 = vld [vmem:[%s5368_s5 + $0x2a0] sm:$0xf]  ;;  %v4618_v31 = vld [vmem:[%s5368_s5 + $0x2ac] sm:$0xf0]  ;;  %v3452_v34 = vor.u32 %v4586_v28, %v3451_v27  ;;  %1433 = vmatpush.bf16.msra.mxu3 %v3724_v26 }
  0x5a   : > { %v3707_v32 = vld [vmem:[%s5368_s5 + $0x3a0] sm:$0xf]  ;;  %v4650_v33 = vld [vmem:[%s5368_s5 + $0x3ac] sm:$0xf0]  ;;  %v3580_v35 = vor.u32 %v4618_v31, %v3579_v29  ;;  %1392 = vmatpush.bf16.msra.mxu0 %v3324_v30  ;;  %v4560_v31 = vld [vmem:[%s5368_s5 + $0xe4] sm:$0xf] }
  0x5b   : > { %v3307_v36 = vld [vmem:[%s5368_s5 + $0x80] sm:$0xf]  ;;  %v4550_v37 = vld [vmem:[%s5368_s5 + $0x8c] sm:$0xf0]  ;;  %v3708_v39 = vor.u32 %v4650_v33, %v3707_v32  ;;  %1406 = vmatpush.bf16.msra.mxu1 %v3452_v34  ;;  %v3357_v33 = vld [vmem:[%s5368_s5 + $0xf0] sm:$0xf0] }
  0x5c   : > { %v3435_v38 = vld [vmem:[%s5368_s5 + $0x180] sm:$0xf]  ;;  %v4582_v40 = vld [vmem:[%s5368_s5 + $0x18c] sm:$0xf0]  ;;  %v3308_v45 = vor.u32 %v4550_v37, %v3307_v36  ;;  %1420 = vmatpush.bf16.msra.mxu2 %v3580_v35  ;;  %v4592_v34 = vld [vmem:[%s5368_s5 + $0x1e4] sm:$0xf] }
  0x5d   : > { %v3563_v41 = vld [vmem:[%s5368_s5 + $0x280] sm:$0xf]  ;;  %v4614_v42 = vld [vmem:[%s5368_s5 + $0x28c] sm:$0xf0]  ;;  %v3436_v46 = vor.u32 %v4582_v40, %v3435_v38  ;;  %1434 = vmatpush.bf16.msra.mxu3 %v3708_v39  ;;  %v3485_v35 = vld [vmem:[%s5368_s5 + $0x1f0] sm:$0xf0] }
  0x5e   : > { %v3691_v43 = vld [vmem:[%s5368_s5 + $0x380] sm:$0xf]  ;;  %v4646_v44 = vld [vmem:[%s5368_s5 + $0x38c] sm:$0xf0]  ;;  %v3564_v47 = vor.u32 %v4614_v42, %v3563_v41  ;;  %1393 = vmatpush.bf16.msra.mxu0 %v3308_v45  ;;  %v4624_v38 = vld [vmem:[%s5368_s5 + $0x2e4] sm:$0xf] }
  0x5f   : > { %v3291_v48 = vld [vmem:[%s5368_s5 + $0x60] sm:$0xf]  ;;  %v4546_v49 = vld [vmem:[%s5368_s5 + $0x6c] sm:$0xf0]  ;;  %v3692_v51 = vor.u32 %v4646_v44, %v3691_v43  ;;  %1407 = vmatpush.bf16.msra.mxu1 %v3436_v46  ;;  %v3613_v39 = vld [vmem:[%s5368_s5 + $0x2f0] sm:$0xf0]  ;;  %v3360_v43 = vor.u32 %v4560_v31, %v3357_v33  ;;  %v3488_v44 = vor.u32 %v4592_v34, %v3485_v35 }
  0x60   : > { %v3419_v50 = vld [vmem:[%s5368_s5 + $0x160] sm:$0xf]  ;;  %v4578_v52 = vld [vmem:[%s5368_s5 + $0x16c] sm:$0xf0]  ;;  %v3292_v57 = vor.u32 %v4546_v49, %v3291_v48  ;;  %1421 = vmatpush.bf16.msra.mxu2 %v3564_v47  ;;  %v4556_v46 = vld [vmem:[%s5368_s5 + $0xc4] sm:$0xf]  ;;  %v3616_v48 = vor.u32 %v4624_v38, %v3613_v39 }
  0x61   : > { %v3547_v53 = vld [vmem:[%s5368_s5 + $0x260] sm:$0xf]  ;;  %v4610_v54 = vld [vmem:[%s5368_s5 + $0x26c] sm:$0xf0]  ;;  %v3420_v58 = vor.u32 %v4578_v52, %v3419_v50  ;;  %1435 = vmatpush.bf16.msra.mxu3 %v3692_v51  ;;  %v3341_v47 = vld [vmem:[%s5368_s5 + $0xd0] sm:$0xf0] }
  0x62   : > { %v3675_v55 = vld [vmem:[%s5368_s5 + $0x360] sm:$0xf]  ;;  %v4642_v56 = vld [vmem:[%s5368_s5 + $0x36c] sm:$0xf0]  ;;  %v3548_v59 = vor.u32 %v4610_v54, %v3547_v53  ;;  %1394 = vmatpush.bf16.msra.mxu0 %v3292_v57  ;;  %v4588_v49 = vld [vmem:[%s5368_s5 + $0x1c4] sm:$0xf]  ;;  %v3344_v57 = vor.u32 %v4556_v46, %v3341_v47 }
  0x63   : > { %v3275_v60 = vld [vmem:[%s5368_s5 + $0x40] sm:$0xf]  ;;  %v4542_v61 = vld [vmem:[%s5368_s5 + $0x4c] sm:$0xf0]  ;;  %v3676_v63 = vor.u32 %v4642_v56, %v3675_v55  ;;  %1408 = vmatpush.bf16.msra.mxu1 %v3420_v58  ;;  %v3469_v50 = vld [vmem:[%s5368_s5 + $0x1d0] sm:$0xf0] }
  0x64   : > { %v3403_v62 = vld [vmem:[%s5368_s5 + $0x140] sm:$0xf]  ;;  %v4574_v0 = vld [vmem:[%s5368_s5 + $0x14c] sm:$0xf0]  ;;  %v3276_v5 = vor.u32 %v4542_v61, %v3275_v60  ;;  %1422 = vmatpush.bf16.msra.mxu2 %v3548_v59  ;;  %v4620_v51 = vld [vmem:[%s5368_s5 + $0x2c4] sm:$0xf]  ;;  %v3472_v58 = vor.u32 %v4588_v49, %v3469_v50 }
  0x65   : > { %v3531_v1 = vld [vmem:[%s5368_s5 + $0x240] sm:$0xf]  ;;  %v4606_v2 = vld [vmem:[%s5368_s5 + $0x24c] sm:$0xf0]  ;;  %v3404_v6 = vor.u32 %v4574_v0, %v3403_v62  ;;  %1436 = vmatpush.bf16.msra.mxu3 %v3676_v63  ;;  %v3597_v52 = vld [vmem:[%s5368_s5 + $0x2d0] sm:$0xf0] }
  0x66   : > { %v3659_v3 = vld [vmem:[%s5368_s5 + $0x340] sm:$0xf]  ;;  %v4638_v4 = vld [vmem:[%s5368_s5 + $0x34c] sm:$0xf0]  ;;  %v3532_v7 = vor.u32 %v4606_v2, %v3531_v1  ;;  %1395 = vmatpush.bf16.msra.mxu0 %v3276_v5  ;;  %v3223_v53 = vld [vmem:[#allocation3] sm:$0xf]  ;;  %v3600_v62 = vor.u32 %v4620_v51, %v3597_v52 }
  0x67   : > { %v3259_v8 = vld [vmem:[%s5368_s5 + $0x20] sm:$0xf]  ;;  %v4538_v9 = vld [vmem:[%s5368_s5 + $0x2c] sm:$0xf0]  ;;  %v3660_v11 = vor.u32 %v4638_v4, %v3659_v3  ;;  %1409 = vmatpush.bf16.msra.mxu1 %v3404_v6  ;;  %v4529_v54 = vld [vmem:[#allocation3 + $0x10] sm:$0xf0] }
  0x68   : > { %v3387_v10 = vld [vmem:[%s5368_s5 + $0x120] sm:$0xf]  ;;  %v4570_v12 = vld [vmem:[%s5368_s5 + $0x12c] sm:$0xf0]  ;;  %v3260_v17 = vor.u32 %v4538_v9, %v3259_v8  ;;  %1423 = vmatpush.bf16.msra.mxu2 %v3532_v7  ;;  %v5468_v56 = vor.u32 %v4529_v54, %v3223_v53  ;;  %v4552_v61 = vld [vmem:[%s5368_s5 + $0xa4] sm:$0xf] }
  0x69   : > { %v3515_v13 = vld [vmem:[%s5368_s5 + $0x220] sm:$0xf]  ;;  %v4602_v14 = vld [vmem:[%s5368_s5 + $0x22c] sm:$0xf0]  ;;  %v3388_v20 = vor.u32 %v4570_v12, %v3387_v10  ;;  %1437 = vmatpush.bf16.msra.mxu3 %v3660_v11  ;;  %v3325_v63 = vld [vmem:[%s5368_s5 + $0xb0] sm:$0xf0] }
  0x6a   : > { %v3643_v15 = vld [vmem:[%s5368_s5 + $0x320] sm:$0xf]  ;;  %v4634_v16 = vld [vmem:[%s5368_s5 + $0x32c] sm:$0xf0]  ;;  %v3516_v21 = vor.u32 %v4602_v14, %v3515_v13  ;;  %1396 = vmatpush.bf16.msra.mxu0 %v3260_v17  ;;  %v4584_v0 = vld [vmem:[%s5368_s5 + $0x1a4] sm:$0xf]  ;;  %v3328_v9 = vor.u32 %v4552_v61, %v3325_v63 }
  0x6b   : > { %v3243_v18 = vld [vmem:[%s5368_s5] sm:$0xf]  ;;  %v4534_v19 = vld [vmem:[%s5368_s5 + $0xc] sm:$0xf0]  ;;  %v3644_v25 = vor.u32 %v4634_v16, %v3643_v15  ;;  %1410 = vmatpush.bf16.msra.mxu1 %v3388_v20  ;;  %v3453_v1 = vld [vmem:[%s5368_s5 + $0x1b0] sm:$0xf0] }
  0x6c   : > { %v3371_v22 = vld [vmem:[%s5368_s5 + $0x100] sm:$0xf]  ;;  %v4566_v23 = vld [vmem:[%s5368_s5 + $0x10c] sm:$0xf0]  ;;  %v3244_v32 = vor.u32 %v4534_v19, %v3243_v18  ;;  %1424 = vmatpush.bf16.msra.mxu2 %v3516_v21  ;;  %v4616_v2 = vld [vmem:[%s5368_s5 + $0x2a4] sm:$0xf]  ;;  %v3456_v10 = vor.u32 %v4584_v0, %v3453_v1 }
  0x6d   : > { %v3499_v24 = vld [vmem:[%s5368_s5 + $0x200] sm:$0xf]  ;;  %v4598_v26 = vld [vmem:[%s5368_s5 + $0x20c] sm:$0xf0]  ;;  %v3372_v36 = vor.u32 %v4566_v23, %v3371_v22  ;;  %1438 = vmatpush.bf16.msra.mxu3 %v3644_v25  ;;  %v3581_v3 = vld [vmem:[%s5368_s5 + $0x2b0] sm:$0xf0] }
  0x6e   : > { %v3627_v27 = vld [vmem:[%s5368_s5 + $0x300] sm:$0xf]  ;;  %v4630_v28 = vld [vmem:[%s5368_s5 + $0x30c] sm:$0xf0]  ;;  %v3500_v37 = vor.u32 %v4598_v26, %v3499_v24  ;;  %1397 = vmatpush.bf16.msra.mxu0 %v3244_v32  ;;  %v4548_v7 = vld [vmem:[%s5368_s5 + $0x84] sm:$0xf]  ;;  %v3584_v14 = vor.u32 %v4616_v2, %v3581_v3 }
  0x6f   : > { %v3867_v29 = vld [vmem:[%s5368_s5 + $0x4e0] sm:$0xf]  ;;  %v4690_v30 = vld [vmem:[%s5368_s5 + $0x4ec] sm:$0xf0]  ;;  %v3628_v40 = vor.u32 %v4630_v28, %v3627_v27  ;;  %1411 = vmatpush.bf16.msra.mxu1 %v3372_v36  ;;  %v3309_v8 = vld [vmem:[%s5368_s5 + $0x90] sm:$0xf0] }
  0x70   : > { %v3868_v41 = vor.u32 %v4690_v30, %v3867_v29  ;;  %v3851_v42 = vld [vmem:[%s5368_s5 + $0x4c0] sm:$0xf]  ;;  %v4686_v45 = vld [vmem:[%s5368_s5 + $0x4cc] sm:$0xf0]  ;;  %1425 = vmatpush.bf16.msra.mxu2 %v3500_v37  ;;  %v4530_v12 = vld [vmem:[#allocation3 + $0x18] sm:$0xf0]  ;;  %v3312_v25 = vor.u32 %v4548_v7, %v3309_v8 }
  0x71   : > { %1439 = vmatpush.bf16.msra.mxu3 %v3628_v40  ;;  %v3852_v55 = vor.u32 %v4686_v45, %v3851_v42  ;;  %v3835_v59 = vld [vmem:[%s5368_s5 + $0x4a0] sm:$0xf]  ;;  %v4682_v60 = vld [vmem:[%s5368_s5 + $0x4ac] sm:$0xf0]  ;;  %1398 = vmatmul.bf16.vlgmr.msra.gmra.mxu0 %v5468_v56  ;;  %v4528_v13 = vld [vmem:[#allocation3 + $0xc] sm:$0xf] }
  0x72   : > { %1446 = vmatpush.bf16.msrb.mxu0 %v3868_v41  ;;  %v3819_v4 = vld [vmem:[%s5368_s5 + $0x480] sm:$0xf]  ;;  %v3836_v5 = vor.u32 %v4682_v60, %v3835_v59  ;;  %v4678_v6 = vld [vmem:[%s5368_s5 + $0x48c] sm:$0xf0]  ;;  %v4580_v15 = vld [vmem:[%s5368_s5 + $0x184] sm:$0xf] }
  0x73   : > { %1460 = vmatpush.bf16.msrb.mxu1 %v3360_v43  ;;  %v3231_v11 = vld [vmem:[#allocation3 + $0x8] sm:$0xf]  ;;  %v3437_v16 = vld [vmem:[%s5368_s5 + $0x190] sm:$0xf0]  ;;  %v3233_v18 = vld [vmem:[#allocation3 + $0x1c] sm:$0xf0]  ;;  %v3820_v22 = vor.u32 %v4678_v6, %v3819_v4 }
  0x74   : > { %1474 = vmatpush.bf16.msrb.mxu2 %v3488_v44  ;;  %v5485_v17 = vor.u32 %v4530_v12, %v3231_v11  ;;  %v4612_v19 = vld [vmem:[%s5368_s5 + $0x284] sm:$0xf]  ;;  %v3565_v20 = vld [vmem:[%s5368_s5 + $0x290] sm:$0xf0]  ;;  %v5489_v21 = vor.u32 %v4528_v13, %v3233_v18  ;;  %v3803_v23 = vld [vmem:[%s5368_s5 + $0x460] sm:$0xf]  ;;  %v3440_v26 = vor.u32 %v4580_v15, %v3437_v16 }
  0x75   : > { %1488 = vmatpush.bf16.msrb.mxu3 %v3616_v48  ;;  %v4674_v24 = vld [vmem:[%s5368_s5 + $0x46c] sm:$0xf0]  ;;  %v4544_v27 = vld [vmem:[%s5368_s5 + $0x64] sm:$0xf]  ;;  %v4527_v28 = vld [vmem:[#allocation3 + $0x4] sm:$0xf]  ;;  %v3568_v30 = vor.u32 %v4612_v19, %v3565_v20 }
  0x76   : > { %1447 = vmatpush.bf16.msrb.mxu0 %v3852_v55  ;;  %1426 = vmatmul.bf16.vlgmr.msra.gmra.mxu2 %v5485_v17  ;;  %v3225_v29 = vld [vmem:[#allocation3 + $0x14] sm:$0xf0]  ;;  %v3293_v31 = vld [vmem:[%s5368_s5 + $0x70] sm:$0xf0]  ;;  %v4576_v32 = vld [vmem:[%s5368_s5 + $0x164] sm:$0xf]  ;;  %v3804_v37 = vor.u32 %v4674_v24, %v3803_v23 }
  0x77   : > { %1461 = vmatpush.bf16.msrb.mxu1 %v3344_v57  ;;  %v3421_v33 = vld [vmem:[%s5368_s5 + $0x170] sm:$0xf0]  ;;  %v5498_v34 = vor.u32 %v4527_v28, %v3225_v29  ;;  %v4608_v35 = vld [vmem:[%s5368_s5 + $0x264] sm:$0xf]  ;;  %1440 = vmatmul.bf16.vlgmr.msra.gmra.mxu3 %v5489_v21  ;;  %v3296_v38 = vor.u32 %v4544_v27, %v3293_v31  ;;  %v3787_v40 = vld [vmem:[%s5368_s5 + $0x440] sm:$0xf] }
  0x78   : > { %1475 = vmatpush.bf16.msrb.mxu2 %v3472_v58  ;;  %v3549_v36 = vld [vmem:[%s5368_s5 + $0x270] sm:$0xf0]  ;;  %v3424_v39 = vor.u32 %v4576_v32, %v3421_v33  ;;  %v4670_v41 = vld [vmem:[%s5368_s5 + $0x44c] sm:$0xf0]  ;;  %v4540_v42 = vld [vmem:[%s5368_s5 + $0x44] sm:$0xf] }
  0x79   : > { %1489 = vmatpush.bf16.msrb.mxu3 %v3600_v62  ;;  %1412 = vmatmul.bf16.vlgmr.msra.gmra.mxu1 %v5498_v34  ;;  %v3552_v43 = vor.u32 %v4608_v35, %v3549_v36  ;;  %v3277_v44 = vld [vmem:[%s5368_s5 + $0x50] sm:$0xf0]  ;;  %v4572_v45 = vld [vmem:[%s5368_s5 + $0x144] sm:$0xf]  ;;  %v3788_v49 = vor.u32 %v4670_v41, %v3787_v40  ;;  %v3771_v52 = vld [vmem:[%s5368_s5 + $0x420] sm:$0xf] }
  0x7a   : > { %1448 = vmatpush.bf16.msrb.mxu0 %v3836_v5  ;;  %v3405_v46 = vld [vmem:[%s5368_s5 + $0x150] sm:$0xf0]  ;;  %v4604_v47 = vld [vmem:[%s5368_s5 + $0x244] sm:$0xf]  ;;  %v3280_v50 = vor.u32 %v4540_v42, %v3277_v44  ;;  %v4666_v53 = vld [vmem:[%s5368_s5 + $0x42c] sm:$0xf0] }
  0x7b   : > { %1462 = vmatpush.bf16.msrb.mxu1 %v3328_v9  ;;  %v3533_v48 = vld [vmem:[%s5368_s5 + $0x250] sm:$0xf0]  ;;  %v3408_v51 = vor.u32 %v4572_v45, %v3405_v46  ;;  %v4536_v54 = vld [vmem:[%s5368_s5 + $0x24] sm:$0xf]  ;;  %v3772_v62 = vor.u32 %v4666_v53, %v3771_v52  ;;  %v3755_v63 = vld [vmem:[%s5368_s5 + $0x400] sm:$0xf] }
  0x7c   : > { %1476 = vmatpush.bf16.msrb.mxu2 %v3456_v10  ;;  %v3536_v55 = vor.u32 %v4604_v47, %v3533_v48  ;;  %v3261_v57 = vld [vmem:[%s5368_s5 + $0x30] sm:$0xf0]  ;;  %v4568_v58 = vld [vmem:[%s5368_s5 + $0x124] sm:$0xf]  ;;  %v4662_v0 = vld [vmem:[%s5368_s5 + $0x40c] sm:$0xf0] }
  0x7d   : > { %1490 = vmatpush.bf16.msrb.mxu3 %v3584_v14  ;;  %v3389_v59 = vld [vmem:[%s5368_s5 + $0x130] sm:$0xf0]  ;;  %v4600_v60 = vld [vmem:[%s5368_s5 + $0x224] sm:$0xf]  ;;  %v3264_v2 = vor.u32 %v4536_v54, %v3261_v57  ;;  %v3756_v14 = vor.u32 %v4662_v0, %v3755_v63  ;;  %v3363_v15 = vld [vmem:[%s5368_s5 + $0xe8] sm:$0xf] }
  0x7e   : > { %1449 = vmatpush.bf16.msrb.mxu0 %v3820_v22  ;;  %v3517_v61 = vld [vmem:[%s5368_s5 + $0x230] sm:$0xf0]  ;;  %v4532_v1 = vld [vmem:[%s5368_s5 + $0x4] sm:$0xf]  ;;  %v3392_v3 = vor.u32 %v4568_v58, %v3389_v59  ;;  %v4563_v16 = vld [vmem:[%s5368_s5 + $0xf4] sm:$0xf0] }
  0x7f   : > { %1463 = vmatpush.bf16.msrb.mxu1 %v3312_v25  ;;  %v3245_v4 = vld [vmem:[%s5368_s5 + $0x10] sm:$0xf0]  ;;  %v4564_v5 = vld [vmem:[%s5368_s5 + $0x104] sm:$0xf]  ;;  %v3520_v7 = vor.u32 %v4600_v60, %v3517_v61  ;;  %v3491_v18 = vld [vmem:[%s5368_s5 + $0x1e8] sm:$0xf]  ;;  %v3364_v28 = vor.u32 %v4563_v16, %v3363_v15 }
  0x80   : > { %1477 = vmatpush.bf16.msrb.mxu2 %v3440_v26  ;;  %v3373_v6 = vld [vmem:[%s5368_s5 + $0x110] sm:$0xf0]  ;;  %v4596_v8 = vld [vmem:[%s5368_s5 + $0x204] sm:$0xf]  ;;  %v3248_v19 = vor.u32 %v4532_v1, %v3245_v4  ;;  %v4595_v22 = vld [vmem:[%s5368_s5 + $0x1f4] sm:$0xf0] }
  0x81   : > { %1491 = vmatpush.bf16.msrb.mxu3 %v3568_v30  ;;  %v3501_v9 = vld [vmem:[%s5368_s5 + $0x210] sm:$0xf0]  ;;  %v4656_v10 = vld [vmem:[%s5368_s5 + $0x3e4] sm:$0xf]  ;;  %v3376_v20 = vor.u32 %v4564_v5, %v3373_v6  ;;  %v3239_v23 = vld [vmem:[#allocation3 + $0x10] sm:$0xf]  ;;  %v3492_v32 = vor.u32 %v4595_v22, %v3491_v18 }
  0x82   : > { %1450 = vmatpush.bf16.msrb.mxu0 %v3804_v37  ;;  %v3741_v11 = vld [vmem:[%s5368_s5 + $0x3f0] sm:$0xf0]  ;;  %v4688_v12 = vld [vmem:[%s5368_s5 + $0x4e4] sm:$0xf]  ;;  %v4531_v24 = vld [vmem:[#allocation3 + $0x20] sm:$0xf0]  ;;  %v3504_v25 = vor.u32 %v4596_v8, %v3501_v9 }
  0x83   : > { %1464 = vmatpush.bf16.msrb.mxu1 %v3296_v38  ;;  %v3869_v13 = vld [vmem:[%s5368_s5 + $0x4f0] sm:$0xf0]  ;;  %v3744_v26 = vor.u32 %v4656_v10, %v3741_v11  ;;  %v4652_v29 = vld [vmem:[%s5368_s5 + $0x3c4] sm:$0xf]  ;;  %v5539_v33 = vor.u32 %v4531_v24, %v3239_v23  ;;  %v3347_v36 = vld [vmem:[%s5368_s5 + $0xc8] sm:$0xf] }
  0x84   : > { %1478 = vmatpush.bf16.msrb.mxu2 %v3424_v39  ;;  %v3872_v27 = vor.u32 %v4688_v12, %v3869_v13  ;;  %v3725_v30 = vld [vmem:[%s5368_s5 + $0x3d0] sm:$0xf0]  ;;  %v4684_v31 = vld [vmem:[%s5368_s5 + $0x4c4] sm:$0xf]  ;;  %v4559_v37 = vld [vmem:[%s5368_s5 + $0xd4] sm:$0xf0] }
  0x85   : > { %1492 = vmatpush.bf16.msrb.mxu3 %v3552_v43  ;;  %v3853_v35 = vld [vmem:[%s5368_s5 + $0x4d0] sm:$0xf0]  ;;  %v3475_v38 = vld [vmem:[%s5368_s5 + $0x1c8] sm:$0xf]  ;;  %v4591_v39 = vld [vmem:[%s5368_s5 + $0x1d4] sm:$0xf0]  ;;  %v3728_v40 = vor.u32 %v4652_v29, %v3725_v30  ;;  %v3348_v42 = vor.u32 %v4559_v37, %v3347_v36 }
  0x86   : > { %1451 = vmatpush.bf16.msrb.mxu0 %v3788_v49  ;;  %v3856_v41 = vor.u32 %v4684_v31, %v3853_v35  ;;  %v4648_v43 = vld [vmem:[%s5368_s5 + $0x3a4] sm:$0xf]  ;;  %v3709_v44 = vld [vmem:[%s5368_s5 + $0x3b0] sm:$0xf0]  ;;  %v3476_v46 = vor.u32 %v4591_v39, %v3475_v38  ;;  %v3331_v48 = vld [vmem:[%s5368_s5 + $0xa8] sm:$0xf] }
  0x87   : > { %1465 = vmatpush.bf16.msrb.mxu1 %v3280_v50  ;;  %v4680_v45 = vld [vmem:[%s5368_s5 + $0x4a4] sm:$0xf]  ;;  %v3837_v47 = vld [vmem:[%s5368_s5 + $0x4b0] sm:$0xf0]  ;;  %v4555_v49 = vld [vmem:[%s5368_s5 + $0xb4] sm:$0xf0]  ;;  %v3712_v52 = vor.u32 %v4648_v43, %v3709_v44 }
  0x88   : > { %1479 = vmatpush.bf16.msrb.mxu2 %v3408_v51  ;;  %v3459_v50 = vld [vmem:[%s5368_s5 + $0x1a8] sm:$0xf]  ;;  %v4587_v51 = vld [vmem:[%s5368_s5 + $0x1b4] sm:$0xf0]  ;;  %v3840_v53 = vor.u32 %v4680_v45, %v3837_v47  ;;  %v3332_v54 = vor.u32 %v4555_v49, %v3331_v48  ;;  %v3693_v57 = vld [vmem:[%s5368_s5 + $0x390] sm:$0xf0] }
  0x89   : > { %1493 = vmatpush.bf16.msrb.mxu3 %v3536_v55  ;;  %v4644_v55 = vld [vmem:[%s5368_s5 + $0x384] sm:$0xf]  ;;  %v3460_v59 = vor.u32 %v4587_v51, %v3459_v50  ;;  %v3821_v60 = vld [vmem:[%s5368_s5 + $0x490] sm:$0xf0]  ;;  %v3315_v61 = vld [vmem:[%s5368_s5 + $0x88] sm:$0xf] }
  0x8a   : > { %1452 = vmatpush.bf16.msrb.mxu0 %v3772_v62  ;;  %v4676_v58 = vld [vmem:[%s5368_s5 + $0x484] sm:$0xf]  ;;  %v4551_v62 = vld [vmem:[%s5368_s5 + $0x94] sm:$0xf0]  ;;  %v3443_v63 = vld [vmem:[%s5368_s5 + $0x188] sm:$0xf]  ;;  %v3696_v1 = vor.u32 %v4644_v55, %v3693_v57 }
  0x8b   : > { %1466 = vmatpush.bf16.msrb.mxu1 %v3264_v2  ;;  %v4583_v0 = vld [vmem:[%s5368_s5 + $0x194] sm:$0xf0]  ;;  %v3824_v2 = vor.u32 %v4676_v58, %v3821_v60  ;;  %v4640_v4 = vld [vmem:[%s5368_s5 + $0x364] sm:$0xf]  ;;  %v3677_v5 = vld [vmem:[%s5368_s5 + $0x370] sm:$0xf0] }
  0x8c   : > { %1480 = vmatpush.bf16.msrb.mxu2 %v3392_v3  ;;  %v3316_v3 = vor.u32 %v4551_v62, %v3315_v61  ;;  %v4672_v6 = vld [vmem:[%s5368_s5 + $0x464] sm:$0xf]  ;;  %v3805_v8 = vld [vmem:[%s5368_s5 + $0x470] sm:$0xf0]  ;;  %v3299_v9 = vld [vmem:[%s5368_s5 + $0x68] sm:$0xf]  ;;  %v3680_v13 = vor.u32 %v4640_v4, %v3677_v5 }
  0x8d   : > { %1494 = vmatpush.bf16.msrb.mxu3 %v3520_v7  ;;  %v3444_v7 = vor.u32 %v4583_v0, %v3443_v63  ;;  %v4547_v10 = vld [vmem:[%s5368_s5 + $0x74] sm:$0xf0]  ;;  %v3427_v11 = vld [vmem:[%s5368_s5 + $0x168] sm:$0xf]  ;;  %v4636_v16 = vld [vmem:[%s5368_s5 + $0x344] sm:$0xf] }
  0x8e   : > { %1453 = vmatpush.bf16.msrb.mxu0 %v3756_v14  ;;  %v4579_v12 = vld [vmem:[%s5368_s5 + $0x174] sm:$0xf0]  ;;  %v3808_v14 = vor.u32 %v4672_v6, %v3805_v8  ;;  %v3300_v15 = vor.u32 %v4547_v10, %v3299_v9  ;;  %v3661_v18 = vld [vmem:[%s5368_s5 + $0x350] sm:$0xf0]  ;;  %v3283_v23 = vld [vmem:[%s5368_s5 + $0x48] sm:$0xf] }
  0x8f   : > { %1467 = vmatpush.bf16.msrb.mxu1 %v3248_v19  ;;  %v4668_v19 = vld [vmem:[%s5368_s5 + $0x444] sm:$0xf]  ;;  %v3789_v22 = vld [vmem:[%s5368_s5 + $0x450] sm:$0xf0]  ;;  %v4543_v24 = vld [vmem:[%s5368_s5 + $0x54] sm:$0xf0] }
  0x90   : > { %1481 = vmatpush.bf16.msrb.mxu2 %v3376_v20  ;;  %v3428_v20 = vor.u32 %v4579_v12, %v3427_v11  ;;  %v3284_v29 = vor.u32 %v4543_v24, %v3283_v23  ;;  %v4632_v30 = vld [vmem:[%s5368_s5 + $0x324] sm:$0xf]  ;;  %v3645_v31 = vld [vmem:[%s5368_s5 + $0x330] sm:$0xf0]  ;;  %v3267_v37 = vld [vmem:[%s5368_s5 + $0x28] sm:$0xf] }
  0x91   : > { %1495 = vmatpush.bf16.msrb.mxu3 %v3504_v25  ;;  %1454 = vmatmul.bf16.vlgmr.msrb.gmra.mxu0 %v5539_v33  ;;  %v3411_v25 = vld [vmem:[%s5368_s5 + $0x148] sm:$0xf]  ;;  %v3773_v36 = vld [vmem:[%s5368_s5 + $0x430] sm:$0xf0]  ;;  %v4539_v38 = vld [vmem:[%s5368_s5 + $0x34] sm:$0xf0] }
  0x92   : > { %1502 = vmatpush.bf16.msra.mxu0 %v3744_v26  ;;  %1468 = vmatmul.bf16.vlgmr.msrb.gmra.mxu1 %v5468_v56  ;;  %v4575_v26 = vld [vmem:[%s5368_s5 + $0x154] sm:$0xf0]  ;;  %v3395_v39 = vld [vmem:[%s5368_s5 + $0x128] sm:$0xf]  ;;  %v3629_v43 = vld [vmem:[%s5368_s5 + $0x310] sm:$0xf0]  ;;  %v3268_v45 = vor.u32 %v4539_v38, %v3267_v37 }
  0x93   : > { %1516 = vmatpush.bf16.msra.mxu1 %v3872_v27  ;;  %1482 = vmatmul.bf16.vlgmr.msrb.gmra.mxu2 %v5498_v34  ;;  %v3664_v27 = vor.u32 %v4636_v16, %v3661_v18  ;;  %v3412_v35 = vor.u32 %v4575_v26, %v3411_v25  ;;  %v3757_v47 = vld [vmem:[%s5368_s5 + $0x410] sm:$0xf0]  ;;  %v3251_v48 = vld [vmem:[%s5368_s5 + $0x8] sm:$0xf]  ;;  %v4535_v50 = vld [vmem:[%s5368_s5 + $0x14] sm:$0xf0] }
  0x94   : > { %1530 = vmatpush.bf16.msra.mxu2 %v3364_v28  ;;  %1496 = vmatmul.bf16.vlgmr.msrb.gmra.mxu3 %v5485_v17  ;;  %v3792_v28 = vor.u32 %v4668_v19, %v3789_v22  ;;  %v3379_v51 = vld [vmem:[%s5368_s5 + $0x108] sm:$0xf]  ;;  %v4659_v58 = vld [vmem:[%s5368_s5 + $0x3f4] sm:$0xf0]  ;;  %v3252_v62 = vor.u32 %v4535_v50, %v3251_v48  ;;  %v4561_v63 = vld [vmem:[%s5368_s5 + $0xec] sm:$0xf] }
  0x95   : > { %1544 = vmatpush.bf16.msra.mxu3 %v3492_v32  ;;  %v4664_v32 = vld [vmem:[%s5368_s5 + $0x424] sm:$0xf]  ;;  %v3747_v55 = vld [vmem:[%s5368_s5 + $0x3e8] sm:$0xf]  ;;  %v4691_v60 = vld [vmem:[%s5368_s5 + $0x4f4] sm:$0xf0] }
  0x96   : > { %1503 = vmatpush.bf16.msra.mxu0 %v3728_v40  ;;  %v4571_v40 = vld [vmem:[%s5368_s5 + $0x134] sm:$0xf0]  ;;  %v3776_v44 = vor.u32 %v4664_v32, %v3773_v36  ;;  %v3365_v0 = vld [vmem:[%s5368_s5 + $0xf8] sm:$0xf0]  ;;  %v3603_v5 = vld [vmem:[%s5368_s5 + $0x2c8] sm:$0xf] }
  0x97   : > { %1517 = vmatpush.bf16.msra.mxu1 %v3856_v41  ;;  %v3648_v41 = vor.u32 %v4632_v30, %v3645_v31  ;;  %v3396_v49 = vor.u32 %v4571_v40, %v3395_v39  ;;  %v4623_v6 = vld [vmem:[%s5368_s5 + $0x2d4] sm:$0xf0]  ;;  %v3368_v8 = vor.u32 %v4561_v63, %v3365_v0  ;;  %v3859_v10 = vld [vmem:[%s5368_s5 + $0x4c8] sm:$0xf]  ;;  %v4557_v12 = vld [vmem:[%s5368_s5 + $0xcc] sm:$0xf] }
  0x98   : > { %1531 = vmatpush.bf16.msra.mxu2 %v3348_v42  ;;  %v4628_v42 = vld [vmem:[%s5368_s5 + $0x304] sm:$0xf]  ;;  %v4655_v9 = vld [vmem:[%s5368_s5 + $0x3d4] sm:$0xf0]  ;;  %v3587_v18 = vld [vmem:[%s5368_s5 + $0x2a8] sm:$0xf] }
  0x99   : > { %1545 = vmatpush.bf16.msra.mxu3 %v3476_v46  ;;  %v4660_v46 = vld [vmem:[%s5368_s5 + $0x404] sm:$0xf]  ;;  %v3632_v57 = vor.u32 %v4628_v42, %v3629_v43  ;;  %v4687_v11 = vld [vmem:[%s5368_s5 + $0x4d4] sm:$0xf0]  ;;  %v3843_v24 = vld [vmem:[%s5368_s5 + $0x4a8] sm:$0xf] }
  0x9a   : > { %1504 = vmatpush.bf16.msra.mxu0 %v3712_v52  ;;  %v4567_v52 = vld [vmem:[%s5368_s5 + $0x114] sm:$0xf0]  ;;  %v3760_v61 = vor.u32 %v4660_v46, %v3757_v47  ;;  %v3860_v16 = vor.u32 %v4687_v11, %v3859_v10  ;;  %v4553_v26 = vld [vmem:[%s5368_s5 + $0xac] sm:$0xf]  ;;  %v3571_v31 = vld [vmem:[%s5368_s5 + $0x288] sm:$0xf] }
  0x9b   : > { %1518 = vmatpush.bf16.msra.mxu1 %v3840_v53  ;;  %v3619_v53 = vld [vmem:[%s5368_s5 + $0x2e8] sm:$0xf]  ;;  %v4619_v19 = vld [vmem:[%s5368_s5 + $0x2b4] sm:$0xf0]  ;;  %v4549_v40 = vld [vmem:[%s5368_s5 + $0x8c] sm:$0xf] }
  0x9c   : > { %1532 = vmatpush.bf16.msra.mxu2 %v3332_v54  ;;  %v4627_v54 = vld [vmem:[%s5368_s5 + $0x2f4] sm:$0xf0]  ;;  %v3827_v38 = vld [vmem:[%s5368_s5 + $0x488] sm:$0xf] }
  0x9d   : > { %1546 = vmatpush.bf16.msra.mxu3 %v3460_v59  ;;  %v3875_v59 = vld [vmem:[%s5368_s5 + $0x4e8] sm:$0xf]  ;;  %v4651_v23 = vld [vmem:[%s5368_s5 + $0x3b4] sm:$0xf0] }
  0x9e   : > { %1505 = vmatpush.bf16.msra.mxu0 %v3696_v1  ;;  %v3380_v1 = vor.u32 %v4567_v52, %v3379_v51  ;;  %v3876_v4 = vor.u32 %v4691_v60, %v3875_v59  ;;  %v4683_v25 = vld [vmem:[%s5368_s5 + $0x4b4] sm:$0xf0]  ;;  %v3683_v47 = vld [vmem:[%s5368_s5 + $0x368] sm:$0xf]  ;;  %v4545_v52 = vld [vmem:[%s5368_s5 + $0x6c] sm:$0xf] }
  0x9f   : > { %1519 = vmatpush.bf16.msra.mxu1 %v3824_v2  ;;  %v3620_v2 = vor.u32 %v4627_v54, %v3619_v53  ;;  %v3844_v30 = vor.u32 %v4683_v25, %v3843_v24  ;;  %v4615_v32 = vld [vmem:[%s5368_s5 + $0x294] sm:$0xf0]  ;;  %v3811_v50 = vld [vmem:[%s5368_s5 + $0x468] sm:$0xf]  ;;  %v3301_v53 = vld [vmem:[%s5368_s5 + $0x78] sm:$0xf0] }
  0xa0   : > { %1533 = vmatpush.bf16.msra.mxu2 %v3316_v3  ;;  %v3748_v3 = vor.u32 %v4659_v58, %v3747_v55  ;;  %v4647_v37 = vld [vmem:[%s5368_s5 + $0x394] sm:$0xf0]  ;;  %v3572_v42 = vor.u32 %v4615_v32, %v3571_v31  ;;  %v3539_v58 = vld [vmem:[%s5368_s5 + $0x248] sm:$0xf]  ;;  %v4625_v31 = vld [vmem:[%s5368_s5 + $0x2ec] sm:$0xf] }
  0xa1   : > { %1547 = vmatpush.bf16.msra.mxu3 %v3444_v7  ;;  %v3731_v7 = vld [vmem:[%s5368_s5 + $0x3c8] sm:$0xf]  ;;  %v4679_v39 = vld [vmem:[%s5368_s5 + $0x494] sm:$0xf0] }
  0xa2   : > { %1506 = vmatpush.bf16.msra.mxu0 %v3680_v13  ;;  %v3349_v13 = vld [vmem:[%s5368_s5 + $0xd8] sm:$0xf0]  ;;  %v4611_v46 = vld [vmem:[%s5368_s5 + $0x274] sm:$0xf0]  ;;  %v3667_v60 = vld [vmem:[%s5368_s5 + $0x348] sm:$0xf] }
  0xa3   : > { %1520 = vmatpush.bf16.msra.mxu1 %v3808_v14  ;;  %v3604_v14 = vor.u32 %v4623_v6, %v3603_v5  ;;  %v3352_v22 = vor.u32 %v4557_v12, %v3349_v13  ;;  %v4675_v51 = vld [vmem:[%s5368_s5 + $0x474] sm:$0xf0]  ;;  %v3795_v63 = vld [vmem:[%s5368_s5 + $0x448] sm:$0xf]  ;;  %v4537_v13 = vld [vmem:[%s5368_s5 + $0x2c] sm:$0xf] }
  0xa4   : > { %1534 = vmatpush.bf16.msra.mxu2 %v3300_v15  ;;  %v3732_v15 = vor.u32 %v4655_v9, %v3731_v7  ;;  %v4607_v59 = vld [vmem:[%s5368_s5 + $0x254] sm:$0xf0]  ;;  %v3523_v6 = vld [vmem:[%s5368_s5 + $0x228] sm:$0xf] }
  0xa5   : > { %1548 = vmatpush.bf16.msra.mxu3 %v3428_v20  ;;  %v3715_v20 = vld [vmem:[%s5368_s5 + $0x3a8] sm:$0xf]  ;;  %v4671_v0 = vld [vmem:[%s5368_s5 + $0x454] sm:$0xf0] }
  0xa6   : > { %1507 = vmatpush.bf16.msra.mxu0 %v3664_v27  ;;  %v3333_v27 = vld [vmem:[%s5368_s5 + $0xb8] sm:$0xf0]  ;;  %v3796_v5 = vor.u32 %v4671_v0, %v3795_v63  ;;  %v4603_v7 = vld [vmem:[%s5368_s5 + $0x234] sm:$0xf0]  ;;  %v3779_v11 = vld [vmem:[%s5368_s5 + $0x428] sm:$0xf] }
  0xa7   : > { %1521 = vmatpush.bf16.msra.mxu1 %v3792_v28  ;;  %v3588_v28 = vor.u32 %v4619_v19, %v3587_v18  ;;  %v3336_v36 = vor.u32 %v4553_v26, %v3333_v27  ;;  %v4635_v10 = vld [vmem:[%s5368_s5 + $0x334] sm:$0xf0]  ;;  %v3763_v24 = vld [vmem:[%s5368_s5 + $0x408] sm:$0xf]  ;;  %v4533_v27 = vld [vmem:[%s5368_s5 + $0xc] sm:$0xf] }
  0xa8   : > { %1535 = vmatpush.bf16.msra.mxu2 %v3284_v29  ;;  %v3716_v29 = vor.u32 %v4651_v23, %v3715_v20  ;;  %v4667_v12 = vld [vmem:[%s5368_s5 + $0x434] sm:$0xf0]  ;;  %v3589_v63 = vld [vmem:[%s5368_s5 + $0x2b8] sm:$0xf0]  ;;  %v4649_v0 = vld [vmem:[%s5368_s5 + $0x3ac] sm:$0xf] }
  0xa9   : > { %1549 = vmatpush.bf16.msra.mxu3 %v3412_v35  ;;  %v3699_v35 = vld [vmem:[%s5368_s5 + $0x388] sm:$0xf]  ;;  %v4599_v18 = vld [vmem:[%s5368_s5 + $0x214] sm:$0xf0]  ;;  %v3780_v20 = vor.u32 %v4667_v12, %v3779_v11  ;;  %v3573_v11 = vld [vmem:[%s5368_s5 + $0x298] sm:$0xf0] }
  0xaa   : > { %1508 = vmatpush.bf16.msra.mxu0 %v3648_v41  ;;  %v3317_v41 = vld [vmem:[%s5368_s5 + $0x98] sm:$0xf0]  ;;  %v3700_v43 = vor.u32 %v4647_v37, %v3699_v35  ;;  %v4631_v23 = vld [vmem:[%s5368_s5 + $0x314] sm:$0xf0]  ;;  %v4645_v12 = vld [vmem:[%s5368_s5 + $0x38c] sm:$0xf] }
  0xab   : > { %1522 = vmatpush.bf16.msra.mxu1 %v3776_v44  ;;  %v3828_v44 = vor.u32 %v4679_v39, %v3827_v38  ;;  %v3320_v48 = vor.u32 %v4549_v40, %v3317_v41  ;;  %v4663_v26 = vld [vmem:[%s5368_s5 + $0x414] sm:$0xf0]  ;;  %v3621_v35 = vld [vmem:[%s5368_s5 + $0x2f8] sm:$0xf0]  ;;  %v4689_v40 = vld [vmem:[%s5368_s5 + $0x4ec] sm:$0xf] }
  0xac   : > { %1536 = vmatpush.bf16.msra.mxu2 %v3268_v45  ;;  %v3555_v45 = vld [vmem:[%s5368_s5 + $0x268] sm:$0xf]  ;;  %v3749_v37 = vld [vmem:[%s5368_s5 + $0x3f8] sm:$0xf0]  ;;  %v3764_v39 = vor.u32 %v4663_v26, %v3763_v24 }
  0xad   : > { %1550 = vmatpush.bf16.msra.mxu3 %v3396_v49  ;;  %v4643_v49 = vld [vmem:[%s5368_s5 + $0x374] sm:$0xf0]  ;;  %v3556_v54 = vor.u32 %v4611_v46, %v3555_v45  ;;  %v3877_v41 = vld [vmem:[%s5368_s5 + $0x4f8] sm:$0xf0]  ;;  %v4589_v46 = vld [vmem:[%s5368_s5 + $0x1cc] sm:$0xf] }
  0xae   : > { %1509 = vmatpush.bf16.msra.mxu0 %v3632_v57  ;;  %v3684_v55 = vor.u32 %v4643_v49, %v3683_v47  ;;  %v3812_v57 = vor.u32 %v4675_v51, %v3811_v50  ;;  %v3477_v47 = vld [vmem:[%s5368_s5 + $0x1d8] sm:$0xf0]  ;;  %v3880_v49 = vor.u32 %v4689_v40, %v3877_v41  ;;  %v4653_v51 = vld [vmem:[%s5368_s5 + $0x3cc] sm:$0xf] }
  0xaf   : > { %1523 = vmatpush.bf16.msra.mxu1 %v3760_v61  ;;  %v3304_v61 = vor.u32 %v4545_v52, %v3301_v53  ;;  %v3605_v50 = vld [vmem:[%s5368_s5 + $0x2d8] sm:$0xf0]  ;;  %v4685_v53 = vld [vmem:[%s5368_s5 + $0x4cc] sm:$0xf] }
  0xb0   : > { %1537 = vmatpush.bf16.msra.mxu2 %v3252_v62  ;;  %v4639_v62 = vld [vmem:[%s5368_s5 + $0x354] sm:$0xf0]  ;;  %v3733_v52 = vld [vmem:[%s5368_s5 + $0x3d8] sm:$0xf0]  ;;  %v4669_v41 = vld [vmem:[%s5368_s5 + $0x44c] sm:$0xf] }
  0xb1   : > { %1551 = vmatpush.bf16.msra.mxu3 %v3380_v1  ;;  %1510 = vmatmul.bf16.vlgmr.msra.gmra.mxu0 %v5489_v21  ;;  %v4541_v1 = vld [vmem:[%s5368_s5 + $0x4c] sm:$0xf]  ;;  %v3557_v24 = vld [vmem:[%s5368_s5 + $0x278] sm:$0xf0] }
  0xb2   : > { %1558 = vmatpush.bf16.msrb.mxu0 %v3620_v2  ;;  %1524 = vmatmul.bf16.vlgmr.msra.gmra.mxu1 %v5539_v33  ;;  %v3285_v2 = vld [vmem:[%s5368_s5 + $0x58] sm:$0xf0] }
  0xb3   : > { %1572 = vmatpush.bf16.msrb.mxu1 %v3748_v3  ;;  %1538 = vmatmul.bf16.vlgmr.msra.gmra.mxu2 %v5468_v56  ;;  %v3540_v3 = vor.u32 %v4607_v59, %v3539_v58  ;;  %v3288_v9 = vor.u32 %v4541_v1, %v3285_v2  ;;  %v3736_v58 = vor.u32 %v4653_v51, %v3733_v52  ;;  %v4585_v59 = vld [vmem:[%s5368_s5 + $0x1ac] sm:$0xf]  ;;  %v3717_v1 = vld [vmem:[%s5368_s5 + $0x3b8] sm:$0xf0] }
  0xb4   : > { %1586 = vmatpush.bf16.msrb.mxu2 %v3876_v4  ;;  %1552 = vmatmul.bf16.vlgmr.msra.gmra.mxu3 %v5498_v34  ;;  %v3668_v4 = vor.u32 %v4639_v62, %v3667_v60  ;;  %v3461_v60 = vld [vmem:[%s5368_s5 + $0x1b8] sm:$0xf0]  ;;  %v4681_v2 = vld [vmem:[%s5368_s5 + $0x4ac] sm:$0xf] }
  0xb5   : > { %1600 = vmatpush.bf16.msrb.mxu3 %v3368_v8  ;;  %v3651_v8 = vld [vmem:[%s5368_s5 + $0x328] sm:$0xf]  ;;  %v3685_v26 = vld [vmem:[%s5368_s5 + $0x378] sm:$0xf0]  ;;  %v4633_v51 = vld [vmem:[%s5368_s5 + $0x32c] sm:$0xf] }
  0xb6   : > { %1559 = vmatpush.bf16.msrb.mxu0 %v3604_v14  ;;  %v3269_v14 = vld [vmem:[%s5368_s5 + $0x38] sm:$0xf0]  ;;  %v3652_v19 = vor.u32 %v4635_v10, %v3651_v8 }
  0xb7   : > { %1573 = vmatpush.bf16.msrb.mxu1 %v3732_v15  ;;  %v3524_v15 = vor.u32 %v4603_v7, %v3523_v6  ;;  %v3272_v25 = vor.u32 %v4537_v13, %v3269_v14  ;;  %v3720_v6 = vor.u32 %v4649_v0, %v3717_v1  ;;  %v4581_v7 = vld [vmem:[%s5368_s5 + $0x18c] sm:$0xf]  ;;  %v3445_v8 = vld [vmem:[%s5368_s5 + $0x198] sm:$0xf0] }
  0xb8   : > { %1587 = vmatpush.bf16.msrb.mxu2 %v3860_v16  ;;  %v3507_v16 = vld [vmem:[%s5368_s5 + $0x208] sm:$0xf]  ;;  %v3701_v13 = vld [vmem:[%s5368_s5 + $0x398] sm:$0xf0]  ;;  %v4677_v14 = vld [vmem:[%s5368_s5 + $0x48c] sm:$0xf] }
  0xb9   : > { %1601 = vmatpush.bf16.msrb.mxu3 %v3352_v22  ;;  %v3635_v22 = vld [vmem:[%s5368_s5 + $0x308] sm:$0xf]  ;;  %v3508_v32 = vor.u32 %v4599_v18, %v3507_v16  ;;  %v3704_v18 = vor.u32 %v4645_v12, %v3701_v13  ;;  %v3669_v40 = vld [vmem:[%s5368_s5 + $0x358] sm:$0xf0]  ;;  %v4629_v0 = vld [vmem:[%s5368_s5 + $0x30c] sm:$0xf] }
  0xba   : > { %1560 = vmatpush.bf16.msrb.mxu0 %v3588_v28  ;;  %v3253_v28 = vld [vmem:[%s5368_s5 + $0x18] sm:$0xf0]  ;;  %v3636_v38 = vor.u32 %v4631_v23, %v3635_v22  ;;  %v4609_v22 = vld [vmem:[%s5368_s5 + $0x26c] sm:$0xf]  ;;  %v4003_v13 = vld [vmem:[%s5377_s28 + $0xf0] sm:$0xf] }
  0xbb   : > { %1574 = vmatpush.bf16.msrb.mxu1 %v3716_v29  ;;  %v4593_v29 = vld [vmem:[%s5368_s5 + $0x1ec] sm:$0xf]  ;;  %v3653_v52 = vld [vmem:[%s5368_s5 + $0x338] sm:$0xf0] }
  0xbc   : > { %1588 = vmatpush.bf16.msrb.mxu2 %v3844_v30  ;;  %v3493_v30 = vld [vmem:[%s5368_s5 + $0x1f8] sm:$0xf0] }
  0xbd   : > { %1602 = vmatpush.bf16.msrb.mxu3 %v3336_v36  ;;  %v4657_v36 = vld [vmem:[%s5368_s5 + $0x3ec] sm:$0xf]  ;;  %v3637_v1 = vld [vmem:[%s5368_s5 + $0x318] sm:$0xf0] }
  0xbe   : > { %1561 = vmatpush.bf16.msrb.mxu0 %v3572_v42  ;;  %v3256_v42 = vor.u32 %v4533_v27, %v3253_v28  ;;  %v3752_v45 = vor.u32 %v4657_v36, %v3749_v37  ;;  %v4673_v27 = vld [vmem:[%s5368_s5 + $0x46c] sm:$0xf]  ;;  %v3813_v28 = vld [vmem:[%s5368_s5 + $0x478] sm:$0xf0] }
  0xbf   : > { %1575 = vmatpush.bf16.msrb.mxu1 %v3700_v43  ;;  %v3496_v43 = vor.u32 %v4593_v29, %v3493_v30  ;;  %v3560_v30 = vor.u32 %v4609_v22, %v3557_v24  ;;  %v4605_v36 = vld [vmem:[%s5368_s5 + $0x24c] sm:$0xf]  ;;  %v3816_v37 = vor.u32 %v4673_v27, %v3813_v28  ;;  %v4759_v24 = vld [vmem:[%s5377_s28 + $0x218] sm:$0xf0]  ;;  %v4123_v28 = vld [vmem:[%s5377_s28 + $0x1e0] sm:$0xf] }
  0xc0   : > { %1589 = vmatpush.bf16.msrb.mxu2 %v3828_v44  ;;  %v3624_v44 = vor.u32 %v4625_v31, %v3621_v35  ;;  %v3413_v35 = vld [vmem:[%s5368_s5 + $0x158] sm:$0xf0] }
  0xc1   : > { %1603 = vmatpush.bf16.msrb.mxu3 %v3320_v48  ;;  %v4621_v48 = vld [vmem:[%s5368_s5 + $0x2cc] sm:$0xf] }
  0xc2   : > { %1562 = vmatpush.bf16.msrb.mxu0 %v3556_v54  ;;  %v3861_v54 = vld [vmem:[%s5368_s5 + $0x4d8] sm:$0xf0] }
  0xc3   : > { %1576 = vmatpush.bf16.msrb.mxu1 %v3684_v55  ;;  %v3480_v55 = vor.u32 %v4589_v46, %v3477_v47  ;;  %v3864_v62 = vor.u32 %v4685_v53, %v3861_v54  ;;  %v4569_v46 = vld [vmem:[%s5368_s5 + $0x12c] sm:$0xf]  ;;  %v3397_v47 = vld [vmem:[%s5368_s5 + $0x138] sm:$0xf0] }
  0xc4   : > { %1590 = vmatpush.bf16.msrb.mxu2 %v3812_v57  ;;  %v3608_v57 = vor.u32 %v4621_v48, %v3605_v50  ;;  %v4601_v48 = vld [vmem:[%s5368_s5 + $0x22c] sm:$0xf]  ;;  %v3525_v50 = vld [vmem:[%s5368_s5 + $0x238] sm:$0xf0] }
  0xc5   : > { %1604 = vmatpush.bf16.msrb.mxu3 %v3304_v61  ;;  %v4617_v61 = vld [vmem:[%s5368_s5 + $0x2ac] sm:$0xf]  ;;  %v3781_v54 = vld [vmem:[%s5368_s5 + $0x438] sm:$0xf0] }
  0xc6   : > { %1563 = vmatpush.bf16.msrb.mxu0 %v3540_v3  ;;  %v3845_v3 = vld [vmem:[%s5368_s5 + $0x4b8] sm:$0xf0]  ;;  %v4665_v53 = vld [vmem:[%s5368_s5 + $0x42c] sm:$0xf] }
  0xc7   : > { %1577 = vmatpush.bf16.msrb.mxu1 %v3668_v4  ;;  %v3464_v4 = vor.u32 %v4585_v59, %v3461_v60  ;;  %v3848_v10 = vor.u32 %v4681_v2, %v3845_v3  ;;  %v3656_v59 = vor.u32 %v4633_v51, %v3653_v52  ;;  %v3381_v60 = vld [vmem:[%s5368_s5 + $0x118] sm:$0xf0]  ;;  %v4661_v2 = vld [vmem:[%s5368_s5 + $0x40c] sm:$0xf]  ;;  %v3883_v51 = vld [vmem:[%s5377_s28] sm:$0xf] }
  0xc8   : > { %1591 = vmatpush.bf16.msrb.mxu2 %v3796_v5  ;;  %v3592_v5 = vor.u32 %v4617_v61, %v3589_v63  ;;  %v4597_v61 = vld [vmem:[%s5368_s5 + $0x20c] sm:$0xf]  ;;  %v3784_v63 = vor.u32 %v4665_v53, %v3781_v54  ;;  %v3765_v3 = vld [vmem:[%s5368_s5 + $0x418] sm:$0xf0]  ;;  %v4727_v53 = vld [vmem:[%s5377_s28 + $0x11c] sm:$0xf] }
  0xc9   : > { %1605 = vmatpush.bf16.msrb.mxu3 %v3288_v9  ;;  %v4613_v9 = vld [vmem:[%s5368_s5 + $0x28c] sm:$0xf]  ;;  %v4694_v52 = vld [vmem:[%s5377_s28 + $0x10] sm:$0xf0] }
  0xca   : > { %1564 = vmatpush.bf16.msrb.mxu0 %v3524_v15  ;;  %v3448_v15 = vor.u32 %v4581_v7, %v3445_v8  ;;  %v3576_v16 = vor.u32 %v4613_v9, %v3573_v11  ;;  %v4183_v7 = vld [vmem:[%s5377_s28 + $0x258] sm:$0xf]  ;;  %v4769_v8 = vld [vmem:[%s5377_s28 + $0x268] sm:$0xf0]  ;;  %v3768_v11 = vor.u32 %v4661_v2, %v3765_v3 }
  0xcb   : > { %1578 = vmatpush.bf16.msrb.mxu1 %v3652_v19  ;;  %v4577_v19 = vld [vmem:[%s5368_s5 + $0x16c] sm:$0xf] }
  0xcc   : > { %1592 = vmatpush.bf16.msrb.mxu2 %v3780_v20  ;;  %v3429_v20 = vld [vmem:[%s5368_s5 + $0x178] sm:$0xf0] }
  0xcd   : > { %1606 = vmatpush.bf16.msrb.mxu3 %v3272_v25  ;;  %v4641_v25 = vld [vmem:[%s5368_s5 + $0x36c] sm:$0xf]  ;;  %v3432_v29 = vor.u32 %v4577_v19, %v3429_v20  ;;  %v3983_v19 = vld [vmem:[%s5377_s28 + $0xc8] sm:$0xf]  ;;  %v4719_v20 = vld [vmem:[%s5377_s28 + $0xd8] sm:$0xf0] }
  0xce   : > { %1565 = vmatpush.bf16.msrb.mxu0 %v3508_v32  ;;  %v3688_v31 = vor.u32 %v4641_v25, %v3685_v26  ;;  %v4573_v32 = vld [vmem:[%s5368_s5 + $0x14c] sm:$0xf]  ;;  %v3963_v25 = vld [vmem:[%s5377_s28 + $0xa0] sm:$0xf]  ;;  %v4714_v26 = vld [vmem:[%s5377_s28 + $0xb0] sm:$0xf0] }
  0xcf   : > { %1579 = vmatpush.bf16.msrb.mxu1 %v3636_v38  ;;  %v3541_v38 = vld [vmem:[%s5368_s5 + $0x258] sm:$0xf0] }
  0xd0   : > { %1593 = vmatpush.bf16.msrb.mxu2 %v3764_v39  ;;  %v4637_v39 = vld [vmem:[%s5368_s5 + $0x34c] sm:$0xf] }
  0xd1   : > { %1607 = vmatpush.bf16.msrb.mxu3 %v3256_v42  ;;  %1566 = vmatmul.bf16.vlgmr.msrb.gmra.mxu0 %v5485_v17  ;;  %v3797_v42 = vld [vmem:[%s5368_s5 + $0x458] sm:$0xf0] }
  0xd2   : > { %1614 = vmatpush.bf16.msra.mxu0 %v3496_v43  ;;  %1580 = vmatmul.bf16.vlgmr.msrb.gmra.mxu1 %v5489_v21  ;;  %v3416_v43 = vor.u32 %v4573_v32, %v3413_v35  ;;  %v4749_v32 = vld [vmem:[%s5377_s28 + $0x1c8] sm:$0xf0] }
  0xd3   : > { %1628 = vmatpush.bf16.msra.mxu1 %v3624_v44  ;;  %1594 = vmatmul.bf16.vlgmr.msrb.gmra.mxu2 %v5539_v33  ;;  %v3544_v44 = vor.u32 %v4605_v36, %v3541_v38  ;;  %v3923_v36 = vld [vmem:[%s5377_s28 + $0x50] sm:$0xf] }
  0xd4   : > { %1642 = vmatpush.bf16.msra.mxu2 %v3752_v45  ;;  %1608 = vmatmul.bf16.vlgmr.msrb.gmra.mxu3 %v5468_v56  ;;  %v3829_v56 = vld [vmem:[%s5368_s5 + $0x498] sm:$0xf0]  ;;  %v3672_v45 = vor.u32 %v4637_v39, %v3669_v40  ;;  %v4083_v39 = vld [vmem:[%s5377_s28 + $0x190] sm:$0xf]  ;;  %v4744_v40 = vld [vmem:[%s5377_s28 + $0x1a0] sm:$0xf0] }
  0xd5   : > { %1656 = vmatpush.bf16.msra.mxu3 %v3880_v49  ;;  %v3832_v23 = vor.u32 %v4677_v14, %v3829_v56  ;;  %v3800_v49 = vor.u32 %v4669_v41, %v3797_v42  ;;  %v4724_v14 = vld [vmem:[%s5377_s28 + $0x100] sm:$0xf0]  ;;  %v4184_v56 = vor.u32 %v4769_v8, %v4183_v7  ;;  %v5764_v42 = vld [vmem:[%s321_s6] sm:$0xf]  ;;  %v4809_v7 = vld [vmem:[%s5377_s28 + $0x3a8] sm:$0xf0] }
  0xd6   : > { %1615 = vmatpush.bf16.msra.mxu0 %v3480_v55  ;;  %v3400_v55 = vor.u32 %v4569_v46, %v3397_v47  ;;  %v4084_v46 = vor.u32 %v4744_v40, %v4083_v39  ;;  %v4063_v47 = vld [vmem:[%s5377_s28 + $0x168] sm:$0xf]  ;;  %v4707_v40 = vld [vmem:[%s5377_s28 + $0x7c] sm:$0xf] }
  0xd7   : > { %1629 = vmatpush.bf16.msra.mxu1 %v3608_v57  ;;  %v4565_v57 = vld [vmem:[%s5368_s5 + $0x10c] sm:$0xf] }
  0xd8   : > { %1643 = vmatpush.bf16.msra.mxu2 %v3736_v58  ;;  %v3528_v58 = vor.u32 %v4601_v48, %v3525_v50  ;;  %v4739_v48 = vld [vmem:[%s5377_s28 + $0x178] sm:$0xf0] }
  0xd9   : > { %1657 = vmatpush.bf16.msra.mxu3 %v3864_v62  ;;  %v3509_v62 = vld [vmem:[%s5368_s5 + $0x218] sm:$0xf0] }
  0xda   : > { %1616 = vmatpush.bf16.msra.mxu0 %v3464_v4  ;;  %v4023_v4 = vld [vmem:[%s5377_s28 + $0x118] sm:$0xf]  ;;  %v3512_v9 = vor.u32 %v4597_v61, %v3509_v62  ;;  %v4185_v61 = vld [vmem:[%s5377_s28 + $0x26c] sm:$0xf0]  ;;  %v3884_v62 = vor.u32 %v4694_v52, %v3883_v51 }
  0xdb   : > { %1630 = vmatpush.bf16.msra.mxu1 %v3592_v5  ;;  %v4729_v5 = vld [vmem:[%s5377_s28 + $0x128] sm:$0xf0] }
  0xdc   : > { %1644 = vmatpush.bf16.msra.mxu2 %v3720_v6  ;;  %v3384_v6 = vor.u32 %v4565_v57, %v3381_v60  ;;  %v4024_v12 = vor.u32 %v4729_v5, %v4023_v4  ;;  %v4025_v57 = vld [vmem:[%s5377_s28 + $0x12c] sm:$0xf0]  ;;  %v4767_v60 = vld [vmem:[%s5377_s28 + $0x25c] sm:$0xf]  ;;  %v4005_v4 = vld [vmem:[%s5377_s28 + $0x104] sm:$0xf0] }
  0xdd   : > { %1658 = vmatpush.bf16.msra.mxu3 %v3848_v10  ;;  %v3640_v10 = vor.u32 %v4629_v0, %v3637_v1  ;;  %v4722_v0 = vld [vmem:[%s5377_s28 + $0xf4] sm:$0xf]  ;;  %v4188_v5 = vor.u32 %v4767_v60, %v4185_v61  ;;  %v4085_v61 = vld [vmem:[%s5377_s28 + $0x1a4] sm:$0xf0] }
  0xde   : > { %1617 = vmatpush.bf16.msra.mxu0 %v3448_v15  ;;  %v4163_v15 = vld [vmem:[%s5377_s28 + $0x230] sm:$0xf] }
  0xdf   : > { %1631 = vmatpush.bf16.msra.mxu1 %v3576_v16  ;;  %v4764_v16 = vld [vmem:[%s5377_s28 + $0x240] sm:$0xf0] }
  0xe0   : > { %1645 = vmatpush.bf16.msra.mxu2 %v3704_v18  ;;  %v4004_v18 = vor.u32 %v4724_v14, %v4003_v13  ;;  %v4164_v22 = vor.u32 %v4764_v16, %v4163_v15  ;;  %v4717_v13 = vld [vmem:[%s5377_s28 + $0xcc] sm:$0xf]  ;;  %v3985_v16 = vld [vmem:[%s5377_s28 + $0xdc] sm:$0xf0] }
  0xe1   : > { %1659 = vmatpush.bf16.msra.mxu3 %v3832_v23  ;;  %v4143_v23 = vld [vmem:[%s5377_s28 + $0x208] sm:$0xf] }
  0xe2   : > { %1618 = vmatpush.bf16.msra.mxu0 %v3432_v29  ;;  %v4144_v27 = vor.u32 %v4759_v24, %v4143_v23  ;;  %v3943_v29 = vld [vmem:[%s5377_s28 + $0x78] sm:$0xf]  ;;  %v4757_v24 = vld [vmem:[%s5377_s28 + $0x20c] sm:$0xf] }
  0xe3   : > { %1632 = vmatpush.bf16.msra.mxu1 %v3560_v30  ;;  %v4709_v30 = vld [vmem:[%s5377_s28 + $0x88] sm:$0xf0] }
  0xe4   : > { %1646 = vmatpush.bf16.msra.mxu2 %v3688_v31  ;;  %v4103_v31 = vld [vmem:[%s5377_s28 + $0x1b8] sm:$0xf]  ;;  %v3944_v35 = vor.u32 %v4709_v30, %v3943_v29  ;;  %v4303_v30 = vld [vmem:[%s5377_s28 + $0x348] sm:$0xf] }
  0xe5   : > { %1660 = vmatpush.bf16.msra.mxu3 %v3816_v37  ;;  %v4704_v37 = vld [vmem:[%s5377_s28 + $0x60] sm:$0xf0]  ;;  %v4104_v38 = vor.u32 %v4749_v32, %v4103_v31 }
  0xe6   : > { %1619 = vmatpush.bf16.msra.mxu0 %v3416_v43  ;;  %v3924_v41 = vor.u32 %v4704_v37, %v3923_v36  ;;  %v4752_v31 = vld [vmem:[%s5377_s28 + $0x1e4] sm:$0xf] }
  0xe7   : > { %1633 = vmatpush.bf16.msra.mxu1 %v3544_v44  ;;  %v3903_v44 = vld [vmem:[%s5377_s28 + $0x28] sm:$0xf] }
  0xe8   : > { %1647 = vmatpush.bf16.msra.mxu2 %v3672_v45  ;;  %v4699_v45 = vld [vmem:[%s5377_s28 + $0x38] sm:$0xf0] }
  0xe9   : > { %1661 = vmatpush.bf16.msra.mxu3 %v3800_v49  ;;  %v556_v49 = vperm.slane %v5764_v42, 0  ;;  %v3904_v50 = vor.u32 %v4699_v45, %v3903_v44  ;;  %v4283_v45 = vld [vmem:[%s5377_s28 + $0x320] sm:$0xf] }
  0xea   : > { %1620 = vmatpush.bf16.msra.mxu0 %v3400_v55  ;;  %v4064_v55 = vor.u32 %v4739_v48, %v4063_v47  ;;  %v4747_v47 = vld [vmem:[%s5377_s28 + $0x1bc] sm:$0xf] }
  0xeb   : > { %1634 = vmatpush.bf16.msra.mxu1 %v3528_v58  ;;  %v4043_v58 = vld [vmem:[%s5377_s28 + $0x140] sm:$0xf] }
  0xec   : > { %1648 = vmatpush.bf16.msra.mxu2 %v3656_v59  ;;  %v4734_v59 = vld [vmem:[%s5377_s28 + $0x150] sm:$0xf0] }
  0xed   : > { %1662 = vmatpush.bf16.msra.mxu3 %v3784_v63  ;;  %v4028_v63 = vor.u32 %v4727_v53, %v4025_v57  ;;  %v4044_v2 = vor.u32 %v4734_v59, %v4043_v58  ;;  %v4702_v53 = vld [vmem:[%s5377_s28 + $0x54] sm:$0xf]  ;;  %v4263_v57 = vld [vmem:[%s5377_s28 + $0x2f8] sm:$0xf]  ;;  %v4789_v58 = vld [vmem:[%s5377_s28 + $0x308] sm:$0xf0] }
  0xee   : > { %1621 = vmatpush.bf16.msra.mxu0 %v3384_v6  ;;  %v1399_v43 = vpop.f32.mrf.mxu0  ;;  %v4343_v6 = vld [vmem:[%s5377_s28 + $0x398] sm:$0xf]  ;;  %v4742_v59 = vld [vmem:[%s5377_s28 + $0x194] sm:$0xf]  ;;  %v4264_v60 = vor.u32 %v4789_v58, %v4263_v57  ;;  %v4797_v58 = vld [vmem:[%s5377_s28 + $0x34c] sm:$0xf] }
  0xef   : > { %1635 = vmatpush.bf16.msra.mxu1 %v3512_v9  ;;  %v1400_v3 = vadd.f32 %v1399_v43, %v556_v49  ;;  %v4344_v9 = vor.u32 %v4809_v7, %v4343_v6  ;;  %v4784_v6 = vld [vmem:[%s5377_s28 + $0x2e0] sm:$0xf0]  ;;  %v4737_v7 = vld [vmem:[%s5377_s28 + $0x16c] sm:$0xf] }
  0xf0   : > { %1649 = vmatpush.bf16.msra.mxu2 %v3640_v10  ;;  %v4762_v10 = vld [vmem:[%s5377_s28 + $0x234] sm:$0xf] }
  0xf1   : > { %1663 = vmatpush.bf16.msra.mxu3 %v3768_v11  ;;  %1622 = vmatmul.bf16.vlgmr.msra.gmra.mxu0 %v5498_v34  ;;  %v3984_v34 = vor.u32 %v4719_v20, %v3983_v19  ;;  %v4165_v11 = vld [vmem:[%s5377_s28 + $0x244] sm:$0xf0]  ;;  %v4323_v19 = vld [vmem:[%s5377_s28 + $0x370] sm:$0xf]  ;;  %v4804_v20 = vld [vmem:[%s5377_s28 + $0x380] sm:$0xf0] }
  0xf2   : > { %2716 = vmatpush.bf16.msrb.mxu0 %v4024_v12  ;;  %1636 = vmatmul.bf16.vlgmr.msra.gmra.mxu1 %v5485_v17  ;;  %v4754_v17 = vld [vmem:[%s5377_s28 + $0x1f0] sm:$0xf0]  ;;  %v4008_v12 = vor.u32 %v4722_v0, %v4005_v4  ;;  %v4324_v23 = vor.u32 %v4804_v20, %v4323_v19  ;;  %v4088_v4 = vor.u32 %v4742_v59, %v4085_v61  ;;  %v4779_v19 = vld [vmem:[%s5377_s28 + $0x2b8] sm:$0xf0]  ;;  %v4305_v59 = vld [vmem:[%s5377_s28 + $0x35c] sm:$0xf0] }
  0xf3   : > { %2730 = vmatpush.bf16.msrb.mxu1 %v4184_v56  ;;  %1650 = vmatmul.bf16.vlgmr.msra.gmra.mxu2 %v5489_v21  ;;  %v3964_v21 = vor.u32 %v4714_v26, %v3963_v25  ;;  %v3988_v25 = vor.u32 %v4717_v13, %v3985_v16  ;;  %v4692_v13 = vld [vmem:[%s5377_s28 + $0x4] sm:$0xf]  ;;  %v4730_v20 = vld [vmem:[%s5377_s28 + $0x130] sm:$0xf0]  ;;  %v4308_v61 = vor.u32 %v4797_v58, %v4305_v59  ;;  %v4765_v58 = vld [vmem:[%s5377_s28 + $0x248] sm:$0xf0] }
  0xf4   : > { %1664 = vmatmul.bf16.vlgmr.msra.gmra.mxu3 %v5539_v33  ;;  %v4124_v33 = vor.u32 %v4754_v17, %v4123_v28  ;;  %2744 = vmatpush.bf16.msrb.mxu2 %v4344_v9  ;;  %v3965_v28 = vld [vmem:[%s5377_s28 + $0xb4] sm:$0xf0] }
  0xf6   : > { %2717 = vmatpush.bf16.msrb.mxu0 %v4004_v18  ;;  %v1413_v54 = vpop.f32.mrf.mxu1  ;;  %v1401_v8 = vpop.f32.mrf.mxu0  ;;  %v4168_v18 = vor.u32 %v4762_v10, %v4165_v11  ;;  %v4065_v11 = vld [vmem:[%s5377_s28 + $0x17c] sm:$0xf0] }
  0xf7   : > { %2731 = vmatpush.bf16.msrb.mxu1 %v4164_v22  ;;  %v1402_v56 = vadd.f32 %v1401_v8, %v556_v49  ;;  %v1414_v15 = vadd.f32 %v1413_v54, %v1400_v3  ;;  %v4105_v49 = vld [vmem:[%s5377_s28 + $0x1cc] sm:$0xf0]  ;;  %v3925_v54 = vld [vmem:[%s5377_s28 + $0x64] sm:$0xf0]  ;;  %v3905_v3 = vld [vmem:[%s5377_s28 + $0x3c] sm:$0xf0]  ;;  %v4068_v16 = vor.u32 %v4737_v7, %v4065_v11 }
  0xf8   : > { %2745 = vmatpush.bf16.msrb.mxu2 %v4324_v23  ;;  %v4732_v23 = vld [vmem:[%s5377_s28 + $0x144] sm:$0xf] }
  0xf9   : > { %v1427_v1 = vpop.f32.mrf.mxu2 }
  0xfa   : > { %2718 = vmatpush.bf16.msrb.mxu0 %v3984_v34  ;;  %v1441_v14 = vpop.f32.mrf.mxu3  ;;  %v4145_v34 = vld [vmem:[%s5377_s28 + $0x21c] sm:$0xf0]  ;;  %v1428_v26 = vadd.f32 %v1427_v1, %v1414_v15 }
  0xfb   : > { %2732 = vmatpush.bf16.msrb.mxu1 %v4144_v27  ;;  %v4712_v27 = vld [vmem:[%s5377_s28 + $0xa4] sm:$0xf]  ;;  %v4031_v15 = vld [vmem:[%s5377_s28 + $0x120] sm:$0xf] }
  0xfc   : > { %v3968_v37 = vor.u32 %v4712_v27, %v3965_v28  ;;  %v4011_v27 = vld [vmem:[%s5377_s28 + $0xf8] sm:$0xf] }
  0xfe   : > { %2719 = vmatpush.bf16.msrb.mxu0 %v3964_v21  ;;  %v1415_v22 = vpop.f32.mrf.mxu1  ;;  %v4148_v21 = vor.u32 %v4757_v24, %v4145_v34  ;;  %v4045_v24 = vld [vmem:[%s5377_s28 + $0x154] sm:$0xf0] }
  0xff   : > { %2733 = vmatpush.bf16.msrb.mxu1 %v4124_v33  ;;  %v1416_v17 = vadd.f32 %v1415_v22, %v1402_v56  ;;  %v4799_v33 = vld [vmem:[%s5377_s28 + $0x358] sm:$0xf0]  ;;  %v4048_v28 = vor.u32 %v4732_v23, %v4045_v24  ;;  %v4265_v23 = vld [vmem:[%s5377_s28 + $0x30c] sm:$0xf0] }
 0x100   : > { %v4304_v32 = vor.u32 %v4799_v33, %v4303_v30  ;;  %v4774_v30 = vld [vmem:[%s5377_s28 + $0x290] sm:$0xf0] }
 0x101   : > { %v1429_v29 = vpop.f32.mrf.mxu2 }
 0x102   : > { %2720 = vmatpush.bf16.msrb.mxu0 %v3944_v35  ;;  %v4125_v35 = vld [vmem:[%s5377_s28 + $0x1f4] sm:$0xf0]  ;;  %v1430_v39 = vadd.f32 %v1429_v29, %v1416_v17  ;;  %2746 = vmatpush.bf16.msrb.mxu2 %v4304_v32  ;;  %v1443_v44 = vpop.f32.mrf.mxu3  ;;  %v4725_v17 = vld [vmem:[%s5377_s28 + $0x108] sm:$0xf0]  ;;  %v4203_v29 = vld [vmem:[%s5377_s28 + $0x280] sm:$0xf] }
 0x103   : > { %2734 = vmatpush.bf16.msrb.mxu1 %v4104_v38  ;;  %v1442_v38 = vadd.f32 %v1441_v14, %v1428_v26  ;;  %v4128_v43 = vor.u32 %v4752_v31, %v4125_v35  ;;  %v3885_v14 = vld [vmem:[%s5377_s28 + $0x14] sm:$0xf0]  ;;  %v4032_v26 = vor.u32 %v4730_v20, %v4031_v15  ;;  %v4204_v33 = vor.u32 %v4774_v30, %v4203_v29  ;;  %v4807_v31 = vld [vmem:[%s5377_s28 + $0x39c] sm:$0xf]  ;;  %v4345_v32 = vld [vmem:[%s5377_s28 + $0x3ac] sm:$0xf0] }
 0x104   : > { %v1444_v52 = vadd.f32 %v1443_v44, %v1430_v39  ;;  %v3888_v34 = vor.u32 %v4692_v13, %v3885_v14  ;;  %v4348_v35 = vor.u32 %v4807_v31, %v4345_v32  ;;  %v3991_v39 = vld [vmem:[%s5377_s28 + $0xd0] sm:$0xf]  ;;  %v4443_v14 = vld [vmem:[%s5377_s28 + $0x460] sm:$0xf]  ;;  %v4834_v15 = vld [vmem:[%s5377_s28 + $0x470] sm:$0xf0] }
 0x105   : > { %v4782_v31 = vld [vmem:[%s5377_s28 + $0x2d4] sm:$0xf]  ;;  %v4245_v32 = vld [vmem:[%s5377_s28 + $0x2e4] sm:$0xf0] }
 0x106   : > { %2721 = vmatpush.bf16.msrb.mxu0 %v3924_v41  ;;  %v3945_v41 = vld [vmem:[%s5377_s28 + $0x8c] sm:$0xf0] }
 0x107   : > { %2735 = vmatpush.bf16.msrb.mxu1 %v4084_v46  ;;  %v4794_v46 = vld [vmem:[%s5377_s28 + $0x330] sm:$0xf0] }
 0x108   : > { %v4284_v48 = vor.u32 %v4794_v46, %v4283_v45  ;;  %v4802_v46 = vld [vmem:[%s5377_s28 + $0x374] sm:$0xf] }
 0x10a   : > { %2722 = vmatpush.bf16.msrb.mxu0 %v3904_v50  ;;  %v3948_v50 = vor.u32 %v4707_v40, %v3945_v41  ;;  %2747 = vmatpush.bf16.msrb.mxu2 %v4284_v48  ;;  %v4503_v40 = vld [vmem:[%s5377_s28 + $0x4d8] sm:$0xf]  ;;  %v4849_v41 = vld [vmem:[%s5377_s28 + $0x4e8] sm:$0xf0] }
 0x10b   : > { %2736 = vmatpush.bf16.msrb.mxu1 %v4064_v55  ;;  %v4108_v55 = vor.u32 %v4747_v47, %v4105_v49  ;;  %v4504_v45 = vor.u32 %v4849_v41, %v4503_v40  ;;  %v4325_v47 = vld [vmem:[%s5377_s28 + $0x384] sm:$0xf0] }
 0x10c   : > { %v4328_v48 = vor.u32 %v4802_v46, %v4325_v47  ;;  %v4728_v46 = vld [vmem:[%s5377_s28 + $0x124] sm:$0xf]  ;;  %v4033_v47 = vld [vmem:[%s5377_s28 + $0x134] sm:$0xf0] }
 0x10d   : > { %2758 = vmatpush.bf16.msrb.mxu3 %v4504_v45  ;;  %v4695_v45 = vld [vmem:[%s5377_s28 + $0x18] sm:$0xf0]  ;;  %v4036_v59 = vor.u32 %v4728_v46, %v4033_v47 }
 0x10e   : > { %2723 = vmatpush.bf16.msrb.mxu0 %v3884_v62  ;;  %v1455_v36 = vpop.f32.mrf.mxu0  ;;  %2748 = vmatpush.bf16.msrb.mxu2 %v4264_v60 }
 0x10f   : > { %2737 = vmatpush.bf16.msrb.mxu1 %v4044_v2  ;;  %v1456_v51 = vadd.f32 %v1455_v36, %v1442_v38  ;;  %v4697_v2 = vld [vmem:[%s5377_s28 + $0x2c] sm:$0xf]  ;;  %v1469_v9 = vpop.f32.mrf.mxu1 }
 0x111   : > { %v1670_v0 = vmax.f32 %v1456_v51, 0.0  ;;  %v4483_v51 = vld [vmem:[%s5377_s28 + $0x4b0] sm:$0xf] }
 0x112   : > { %2772 = vmatpush.bf16.msra.mxu0 %v4028_v63  ;;  %v3928_v63 = vor.u32 %v4702_v53, %v3925_v54  ;;  %v3971_v53 = vld [vmem:[%s5377_s28 + $0xa8] sm:$0xf]  ;;  %v4715_v54 = vld [vmem:[%s5377_s28 + $0xb8] sm:$0xf0] }
 0x113   : > { %2786 = vmatpush.bf16.msra.mxu1 %v4188_v5  ;;  %v4243_v5 = vld [vmem:[%s5377_s28 + $0x2d0] sm:$0xf] }
 0x114   : > { %v4244_v10 = vor.u32 %v4784_v6, %v4243_v5 }
 0x116   : > { %2773 = vmatpush.bf16.msra.mxu0 %v4008_v12  ;;  %v1457_v62 = vpop.f32.mrf.mxu0  ;;  %v3908_v12 = vor.u32 %v4697_v2, %v3905_v3  ;;  %2749 = vmatpush.bf16.msrb.mxu2 %v4244_v10  ;;  %v3951_v3 = vld [vmem:[%s5377_s28 + $0x80] sm:$0xf] }
 0x117   : > { %2787 = vmatpush.bf16.msra.mxu1 %v4168_v18  ;;  %v1458_v1 = vadd.f32 %v1457_v62, %v1444_v52  ;;  %v4223_v18 = vld [vmem:[%s5377_s28 + $0x2a8] sm:$0xf]  ;;  %v1471_v38 = vpop.f32.mrf.mxu1  ;;  %v1497_v44 = vpop.f32.mrf.mxu3  ;;  %v4844_v52 = vld [vmem:[%s5377_s28 + $0x4c0] sm:$0xf0] }
 0x118   : > { %v4224_v22 = vor.u32 %v4779_v19, %v4223_v18  ;;  %v4705_v18 = vld [vmem:[%s5377_s28 + $0x68] sm:$0xf0]  ;;  %v4444_v19 = vor.u32 %v4834_v15, %v4443_v14  ;;  %v3993_v14 = vld [vmem:[%s5377_s28 + $0xe4] sm:$0xf0]  ;;  %v4505_v15 = vld [vmem:[%s5377_s28 + $0x4ec] sm:$0xf0] }
 0x119   : > { %v1674_v8 = vmax.f32 %v1458_v1, 0.0  ;;  %v4839_v1 = vld [vmem:[%s5377_s28 + $0x498] sm:$0xf0] }
 0x11a   : > { %2774 = vmatpush.bf16.msra.mxu0 %v3988_v25  ;;  %v557_v25 = vperm.slane %v5764_v42, 1  ;;  %2750 = vmatpush.bf16.msrb.mxu2 %v4224_v22  ;;  %v4787_v22 = vld [vmem:[%s5377_s28 + $0x2fc] sm:$0xf] }
 0x11b   : > { %2788 = vmatpush.bf16.msra.mxu1 %v4148_v21  ;;  %v5817_v56 = vpack.c.bf16 %v1674_v8, %v1670_v0  ;;  %v1483_v21 = vpop.f32.mrf.mxu2  ;;  %v4463_v0 = vld [vmem:[%s5377_s28 + $0x488] sm:$0xf]  ;;  %v4792_v8 = vld [vmem:[%s5377_s28 + $0x324] sm:$0xf]  ;;  %v4268_v24 = vor.u32 %v4787_v22, %v4265_v23  ;;  %v4755_v22 = vld [vmem:[%s5377_s28 + $0x1f8] sm:$0xf0] }
 0x11c   : > { %v1470_v36 = vadd.f32 %v1469_v9, %v557_v25  ;;  %v1472_v57 = vadd.f32 %v1471_v38, %v557_v25  ;;  %v4464_v5 = vor.u32 %v4839_v1, %v4463_v0  ;;  %v4285_v9 = vld [vmem:[%s5377_s28 + $0x334] sm:$0xf0]  ;;  %v4248_v38 = vor.u32 %v4782_v31, %v4245_v32  ;;  %v4013_v0 = vld [vmem:[%s5377_s28 + $0x10c] sm:$0xf0]  ;;  %v4837_v32 = vld [vmem:[%s5377_s28 + $0x48c] sm:$0xf] }
 0x11d   : > { %2724 = vmatmul.bf16.vlgmr.msrb.gmra.mxu0 %v5817_v56  ;;  %v4288_v11 = vor.u32 %v4792_v8, %v4285_v9  ;;  %v4363_v8 = vld [vmem:[%s5377_s28 + $0x3c0] sm:$0xf]  ;;  %v4814_v9 = vld [vmem:[%s5377_s28 + $0x3d0] sm:$0xf0]  ;;  %v558_v23 = vperm.slane %v5764_v42, 2 }
 0x11e   : > { %2775 = vmatpush.bf16.msra.mxu0 %v3968_v37  ;;  %v4012_v37 = vor.u32 %v4725_v17, %v4011_v27  ;;  %2751 = vmatpush.bf16.msrb.mxu2 %v4204_v33  ;;  %v1484_v49 = vadd.f32 %v1483_v21, %v1470_v36  ;;  %v4829_v27 = vld [vmem:[%s5377_s28 + $0x448] sm:$0xf0]  ;;  %v3911_v17 = vld [vmem:[%s5377_s28 + $0x30] sm:$0xf]  ;;  %v4700_v21 = vld [vmem:[%s5377_s28 + $0x40] sm:$0xf0] }
 0x11f   : > { %2789 = vmatpush.bf16.msra.mxu1 %v4128_v43  ;;  %v4720_v43 = vld [vmem:[%s5377_s28 + $0xe0] sm:$0xf0]  ;;  %v1499_v10 = vpop.f32.mrf.mxu3  ;;  %v4191_v36 = vld [vmem:[%s5377_s28 + $0x260] sm:$0xf]  ;;  %v3912_v41 = vor.u32 %v4700_v21, %v3911_v17 }
 0x120   : > { %v1498_v62 = vadd.f32 %v1497_v44, %v1484_v49  ;;  %v4824_v44 = vld [vmem:[%s5377_s28 + $0x420] sm:$0xf0] }
 0x122   : > { %2776 = vmatpush.bf16.msra.mxu0 %v3948_v50  ;;  %2800 = vmatpush.bf16.msra.mxu2 %v4348_v35  ;;  %v3992_v50 = vor.u32 %v4720_v43, %v3991_v39  ;;  %v3891_v35 = vld [vmem:[%s5377_s28 + $0x8] sm:$0xf]  ;;  %v4403_v43 = vld [vmem:[%s5377_s28 + $0x410] sm:$0xf] }
 0x123   : > { %2790 = vmatpush.bf16.msra.mxu1 %v4108_v55  ;;  %v4484_v55 = vor.u32 %v4844_v52, %v4483_v51  ;;  %v1485_v60 = vpop.f32.mrf.mxu2  ;;  %v4225_v51 = vld [vmem:[%s5377_s28 + $0x2bc] sm:$0xf0] }
 0x124   : > { %v1486_v7 = vadd.f32 %v1485_v60, %v1472_v57  ;;  %v4171_v57 = vld [vmem:[%s5377_s28 + $0x238] sm:$0xf]  ;;  %v4723_v60 = vld [vmem:[%s5377_s28 + $0xfc] sm:$0xf] }
 0x125   : > { %2759 = vmatpush.bf16.msrb.mxu3 %v4484_v55  ;;  %v3892_v55 = vor.u32 %v4695_v45, %v3891_v35  ;;  %v4465_v35 = vld [vmem:[%s5377_s28 + $0x49c] sm:$0xf0] }
 0x126   : > { %2777 = vmatpush.bf16.msra.mxu0 %v3928_v63  ;;  %2801 = vmatpush.bf16.msra.mxu2 %v4328_v48  ;;  %v3972_v63 = vor.u32 %v4715_v54, %v3971_v53  ;;  %v1500_v20 = vadd.f32 %v1499_v10, %v1486_v7  ;;  %v4404_v48 = vor.u32 %v4824_v44, %v4403_v43  ;;  %v4760_v7 = vld [vmem:[%s5377_s28 + $0x220] sm:$0xf0]  ;;  %v4091_v43 = vld [vmem:[%s5377_s28 + $0x198] sm:$0xf]  ;;  %v4745_v44 = vld [vmem:[%s5377_s28 + $0x1a8] sm:$0xf0] }
 0x127   : > { %2791 = vmatpush.bf16.msra.mxu1 %v4088_v4  ;;  %v4710_v4 = vld [vmem:[%s5377_s28 + $0x90] sm:$0xf0]  ;;  %v4016_v10 = vor.u32 %v4723_v60, %v4013_v0 }
 0x128   : > { %v3952_v13 = vor.u32 %v4710_v4, %v3951_v3  ;;  %v4205_v3 = vld [vmem:[%s5377_s28 + $0x294] sm:$0xf0]  ;;  %v4172_v4 = vor.u32 %v4765_v58, %v4171_v57  ;;  %v4071_v57 = vld [vmem:[%s5377_s28 + $0x170] sm:$0xf]  ;;  %v4740_v58 = vld [vmem:[%s5377_s28 + $0x180] sm:$0xf0] }
 0x129   : > { %2760 = vmatpush.bf16.msrb.mxu3 %v4464_v5  ;;  %v4151_v5 = vld [vmem:[%s5377_s28 + $0x210] sm:$0xf] }
 0x12a   : > { %2778 = vmatpush.bf16.msra.mxu0 %v3908_v12  ;;  %2802 = vmatpush.bf16.msra.mxu2 %v4308_v61  ;;  %v4383_v61 = vld [vmem:[%s5377_s28 + $0x3e8] sm:$0xf] }
 0x12b   : > { %2792 = vmatpush.bf16.msra.mxu1 %v4068_v16  ;;  %v3931_v16 = vld [vmem:[%s5377_s28 + $0x58] sm:$0xf] }
 0x12c   : > { %v3932_v25 = vor.u32 %v4705_v18, %v3931_v16  ;;  %v4152_v16 = vor.u32 %v4760_v7, %v4151_v5  ;;  %v4072_v5 = vor.u32 %v4740_v58, %v4071_v57  ;;  %v4735_v7 = vld [vmem:[%s5377_s28 + $0x158] sm:$0xf0]  ;;  %v4753_v58 = vld [vmem:[%s5377_s28 + $0x1ec] sm:$0xf] }
 0x12d   : > { %2761 = vmatpush.bf16.msrb.mxu3 %v4444_v19 }
 0x12e   : > { %2779 = vmatpush.bf16.msra.mxu0 %v3888_v34  ;;  %v1511_v2 = vpop.f32.mrf.mxu0  ;;  %2803 = vmatpush.bf16.msra.mxu2 %v4288_v11  ;;  %v4364_v11 = vor.u32 %v4814_v9, %v4363_v8  ;;  %v4768_v8 = vld [vmem:[%s5377_s28 + $0x264] sm:$0xf] }
 0x12f   : > { %2793 = vmatpush.bf16.msra.mxu1 %v4048_v28  ;;  %v1525_v6 = vpop.f32.mrf.mxu1  ;;  %v1512_v12 = vadd.f32 %v1511_v2, %v1498_v62  ;;  %v4819_v62 = vld [vmem:[%s5377_s28 + $0x3f8] sm:$0xf0]  ;;  %v4772_v2 = vld [vmem:[%s5377_s28 + $0x284] sm:$0xf] }
 0x130   : > { %v4384_v1 = vor.u32 %v4819_v62, %v4383_v61  ;;  %v4827_v62 = vld [vmem:[%s5377_s28 + $0x43c] sm:$0xf] }
 0x131   : > { %2780 = vmatmul.bf16.vlgmr.msra.gmra.mxu0 %v5817_v56  ;;  %v1526_v34 = vadd.f32 %v1525_v6, %v1512_v12  ;;  %v4208_v6 = vor.u32 %v4772_v2, %v4205_v3  ;;  %v4847_v12 = vld [vmem:[%s5377_s28 + $0x4dc] sm:$0xf]  ;;  %v3913_v2 = vld [vmem:[%s5377_s28 + $0x44] sm:$0xf0] }
 0x132   : > { %2828 = vmatpush.bf16.msrb.mxu0 %v4032_v26  ;;  %v4423_v26 = vld [vmem:[%s5377_s28 + $0x438] sm:$0xf]  ;;  %2804 = vmatpush.bf16.msra.mxu2 %v4268_v24  ;;  %v4508_v18 = vor.u32 %v4847_v12, %v4505_v15 }
 0x133   : > { %v4424_v29 = vor.u32 %v4829_v27, %v4423_v26  ;;  %v1671_v39 = vmax.f32 %v1526_v34, 0.0  ;;  %v4842_v34 = vld [vmem:[%s5377_s28 + $0x4b4] sm:$0xf]  ;;  %v4713_v26 = vld [vmem:[%s5377_s28 + $0xac] sm:$0xf] }
 0x134   : > { %v3973_v27 = vld [vmem:[%s5377_s28 + $0xbc] sm:$0xf0]  ;;  %v4193_v12 = vld [vmem:[%s5377_s28 + $0x274] sm:$0xf0] }
 0x135   : > { %2762 = vmatpush.bf16.msrb.mxu3 %v4424_v29  ;;  %v4111_v29 = vld [vmem:[%s5377_s28 + $0x1c0] sm:$0xf]  ;;  %v3976_v31 = vor.u32 %v4713_v26, %v3973_v27  ;;  %v4763_v27 = vld [vmem:[%s5377_s28 + $0x23c] sm:$0xf] }
 0x136   : > { %2829 = vmatpush.bf16.msrb.mxu0 %v4012_v37  ;;  %v1513_v28 = vpop.f32.mrf.mxu0  ;;  %v4770_v37 = vld [vmem:[%s5377_s28 + $0x270] sm:$0xf0]  ;;  %2805 = vmatpush.bf16.msra.mxu2 %v4248_v38  ;;  %v4468_v38 = vor.u32 %v4837_v32, %v4465_v35  ;;  %v4019_v35 = vld [vmem:[%s5377_s28 + $0x100] sm:$0xf] }
 0x137   : > { %v1514_v30 = vadd.f32 %v1513_v28, %v1500_v20  ;;  %v1527_v33 = vpop.f32.mrf.mxu1  ;;  %v4192_v52 = vor.u32 %v4770_v37, %v4191_v36  ;;  %v1553_v19 = vpop.f32.mrf.mxu3  ;;  %v4131_v20 = vld [vmem:[%s5377_s28 + $0x1e8] sm:$0xf]  ;;  %v4708_v36 = vld [vmem:[%s5377_s28 + $0x84] sm:$0xf]  ;;  %v3953_v37 = vld [vmem:[%s5377_s28 + $0x94] sm:$0xf0] }
 0x138   : > { %v4132_v17 = vor.u32 %v4755_v22, %v4131_v20  ;;  %v3956_v47 = vor.u32 %v4708_v36, %v3953_v37  ;;  %v4039_v22 = vld [vmem:[%s5377_s28 + $0x128] sm:$0xf]  ;;  %v4810_v32 = vld [vmem:[%s5377_s28 + $0x3b0] sm:$0xf0] }
 0x139   : > { %v1528_v40 = vadd.f32 %v1527_v33, %v1514_v30  ;;  %2763 = vmatpush.bf16.msrb.mxu3 %v4404_v48  ;;  %v4750_v30 = vld [vmem:[%s5377_s28 + $0x1d0] sm:$0xf0]  ;;  %v4832_v48 = vld [vmem:[%s5377_s28 + $0x464] sm:$0xf] }
 0x13a   : > { %2830 = vmatpush.bf16.msrb.mxu0 %v3992_v50  ;;  %v4777_v50 = vld [vmem:[%s5377_s28 + $0x2ac] sm:$0xf]  ;;  %v4726_v36 = vld [vmem:[%s5377_s28 + $0x110] sm:$0xf0] }
 0x13b   : > { %v1675_v49 = vmax.f32 %v1528_v40, 0.0  ;;  %v4228_v53 = vor.u32 %v4777_v50, %v4225_v51  ;;  %v4112_v40 = vor.u32 %v4750_v30, %v4111_v29  ;;  %v4703_v51 = vld [vmem:[%s5377_s28 + $0x5c] sm:$0xf]  ;;  %v4351_v30 = vld [vmem:[%s5377_s28 + $0x3a0] sm:$0xf] }
 0x13d   : > { %v5874_v54 = vpack.c.bf16 %v1675_v49, %v1671_v39  ;;  %2806 = vmatpush.bf16.msra.mxu2 %v4228_v53  ;;  %2764 = vmatpush.bf16.msrb.mxu3 %v4384_v1  ;;  %v4445_v49 = vld [vmem:[%s5377_s28 + $0x474] sm:$0xf0]  ;;  %v4698_v1 = vld [vmem:[%s5377_s28 + $0x34] sm:$0xf] }
 0x13e   : > { %2831 = vmatpush.bf16.msrb.mxu0 %v3972_v63  ;;  %v1539_v63 = vpop.f32.mrf.mxu2  ;;  %v4448_v53 = vor.u32 %v4832_v48, %v4445_v49  ;;  %v4331_v48 = vld [vmem:[%s5377_s28 + $0x378] sm:$0xf] }
 0x13f   : > { %2738 = vmatmul.bf16.vlgmr.msrb.gmra.mxu1 %v5874_v54  ;;  %v1540_v33 = vadd.f32 %v1539_v63, %v558_v23  ;;  %v1555_v50 = vpop.f32.mrf.mxu3  ;;  %v4425_v63 = vld [vmem:[%s5377_s28 + $0x44c] sm:$0xf0]  ;;  %v4365_v49 = vld [vmem:[%s5377_s28 + $0x3d4] sm:$0xf0] }
 0x140   : > { %2842 = vmatpush.bf16.msrb.mxu1 %v4192_v52  ;;  %v3933_v52 = vld [vmem:[%s5377_s28 + $0x6c] sm:$0xf0]  ;;  %v4428_v3 = vor.u32 %v4827_v62, %v4425_v63  ;;  %v4800_v63 = vld [vmem:[%s5377_s28 + $0x360] sm:$0xf0] }
 0x141   : > { %2807 = vmatpush.bf16.msra.mxu2 %v4208_v6  ;;  %2765 = vmatpush.bf16.msrb.mxu3 %v4364_v11  ;;  %v1554_v45 = vadd.f32 %v1553_v19, %v1540_v33  ;;  %v3936_v61 = vor.u32 %v4703_v51, %v3933_v52  ;;  %v4051_v6 = vld [vmem:[%s5377_s28 + $0x148] sm:$0xf]  ;;  %v3916_v11 = vor.u32 %v4698_v1, %v3913_v2  ;;  %v4385_v33 = vld [vmem:[%s5377_s28 + $0x3fc] sm:$0xf0]  ;;  %v4805_v51 = vld [vmem:[%s5377_s28 + $0x388] sm:$0xf0] }
 0x142   : > { %2832 = vmatpush.bf16.msrb.mxu0 %v3952_v13  ;;  %v4718_v13 = vld [vmem:[%s5377_s28 + $0xd4] sm:$0xf]  ;;  %v4052_v20 = vor.u32 %v4735_v7, %v4051_v6  ;;  %v3999_v52 = vld [vmem:[%s5377_s28 + $0xd8] sm:$0xf]  ;;  %v4311_v62 = vld [vmem:[%s5377_s28 + $0x350] sm:$0xf] }
 0x143   : > { %v3996_v24 = vor.u32 %v4718_v13, %v3993_v14  ;;  %v4822_v13 = vld [vmem:[%s5377_s28 + $0x414] sm:$0xf]  ;;  %v4405_v14 = vld [vmem:[%s5377_s28 + $0x424] sm:$0xf0]  ;;  %v4716_v1 = vld [vmem:[%s5377_s28 + $0xc0] sm:$0xf0] }
 0x144   : > { %2843 = vmatpush.bf16.msrb.mxu1 %v4172_v4  ;;  %v4408_v19 = vor.u32 %v4822_v13, %v4405_v14  ;;  %v4291_v7 = vld [vmem:[%s5377_s28 + $0x328] sm:$0xf] }
 0x145   : > { %2814 = vmatpush.bf16.msra.mxu3 %v4508_v18  ;;  %v3893_v18 = vld [vmem:[%s5377_s28 + $0x1c] sm:$0xf0] }
 0x146   : > { %2833 = vmatpush.bf16.msrb.mxu0 %v3932_v25  ;;  %v4485_v25 = vld [vmem:[%s5377_s28 + $0x4c4] sm:$0xf0]  ;;  %v1541_v21 = vpop.f32.mrf.mxu2 }
 0x147   : > { %v4488_v28 = vor.u32 %v4842_v34, %v4485_v25  ;;  %v1542_v46 = vadd.f32 %v1541_v21, %v558_v23  ;;  %v4731_v23 = vld [vmem:[%s5377_s28 + $0x138] sm:$0xf0] }
 0x148   : > { %2844 = vmatpush.bf16.msrb.mxu1 %v4152_v16  ;;  %v4693_v16 = vld [vmem:[%s5377_s28 + $0xc] sm:$0xf]  ;;  %v4040_v29 = vor.u32 %v4731_v23, %v4039_v22  ;;  %v4790_v23 = vld [vmem:[%s5377_s28 + $0x310] sm:$0xf0] }
 0x149   : > { %2815 = vmatpush.bf16.msra.mxu3 %v4488_v28  ;;  %v1556_v60 = vadd.f32 %v1555_v50, %v1542_v46  ;;  %v3896_v26 = vor.u32 %v4693_v16, %v3893_v18  ;;  %v4173_v28 = vld [vmem:[%s5377_s28 + $0x24c] sm:$0xf0]  ;;  %v4352_v46 = vor.u32 %v4810_v32, %v4351_v30  ;;  %v4785_v30 = vld [vmem:[%s5377_s28 + $0x2e8] sm:$0xf0] }
 0x14a   : > { %2834 = vmatpush.bf16.msrb.mxu0 %v3912_v41  ;;  %v4093_v16 = vld [vmem:[%s5377_s28 + $0x1ac] sm:$0xf0]  ;;  %v4701_v32 = vld [vmem:[%s5377_s28 + $0x48] sm:$0xf0] }
 0x14c   : > { %2845 = vmatpush.bf16.msrb.mxu1 %v4132_v17  ;;  %v4817_v17 = vld [vmem:[%s5377_s28 + $0x3ec] sm:$0xf] }
 0x14d   : > { %2816 = vmatpush.bf16.msra.mxu3 %v4468_v38  ;;  %v4388_v37 = vor.u32 %v4817_v17, %v4385_v33  ;;  %v4176_v38 = vor.u32 %v4763_v27, %v4173_v28  ;;  %v4073_v27 = vld [vmem:[%s5377_s28 + $0x184] sm:$0xf0] }
 0x14e   : > { %2835 = vmatpush.bf16.msrb.mxu0 %v3892_v55  ;;  %v1567_v39 = vpop.f32.mrf.mxu0  ;;  %v4092_v55 = vor.u32 %v4745_v44, %v4091_v43  ;;  %v4153_v43 = vld [vmem:[%s5377_s28 + $0x224] sm:$0xf0]  ;;  %v4812_v44 = vld [vmem:[%s5377_s28 + $0x3c4] sm:$0xf] }
 0x14f   : > { %v1581_v41 = vpop.f32.mrf.mxu1  ;;  %2794 = vmatmul.bf16.vlgmr.msra.gmra.mxu1 %v5874_v54 }
 0x150   : > { %2846 = vmatpush.bf16.msrb.mxu1 %v4112_v40 }
 0x151   : > { %2836 = vmatmul.bf16.vlgmr.msrb.gmra.mxu0 %v5817_v56  ;;  %2817 = vmatpush.bf16.msra.mxu3 %v4448_v53  ;;  %v4721_v53 = vld [vmem:[%s5377_s28 + $0xe8] sm:$0xf0] }
 0x152   : > { %2884 = vmatpush.bf16.msra.mxu0 %v4036_v59  ;;  %v1568_v59 = vadd.f32 %v1567_v39, %v1554_v45  ;;  %v4758_v39 = vld [vmem:[%s5377_s28 + $0x214] sm:$0xf] }
 0x153   : > { %v4156_v57 = vor.u32 %v4758_v39, %v4153_v43 }
 0x154   : > { %2847 = vmatpush.bf16.msrb.mxu1 %v4092_v55  ;;  %v1582_v9 = vadd.f32 %v1581_v41, %v1568_v59  ;;  %v4368_v55 = vor.u32 %v4812_v44, %v4365_v49  ;;  %v4133_v59 = vld [vmem:[%s5377_s28 + $0x1fc] sm:$0xf0]  ;;  %v4780_v49 = vld [vmem:[%s5377_s28 + $0x2c0] sm:$0xf0] }
 0x155   : > { %2818 = vmatpush.bf16.msra.mxu3 %v4428_v3  ;;  %v4136_v2 = vor.u32 %v4753_v58, %v4133_v59  ;;  %v4748_v3 = vld [vmem:[%s5377_s28 + $0x1c4] sm:$0xf] }
 0x156   : > { %2885 = vmatpush.bf16.msra.mxu0 %v4016_v10  ;;  %v1595_v0 = vpop.f32.mrf.mxu2  ;;  %v1569_v4 = vpop.f32.mrf.mxu0 }
 0x157   : > { %v1570_v10 = vadd.f32 %v1569_v4, %v1556_v60  ;;  %v1583_v15 = vpop.f32.mrf.mxu1  ;;  %v1596_v34 = vadd.f32 %v1595_v0, %v1582_v9  ;;  %v1609_v45 = vpop.f32.mrf.mxu3  ;;  %v4332_v60 = vor.u32 %v4805_v51, %v4331_v48  ;;  %v3979_v0 = vld [vmem:[%s5377_s28 + $0xb0] sm:$0xf]  ;;  %v4113_v4 = vld [vmem:[%s5377_s28 + $0x1d4] sm:$0xf0]  ;;  %v3959_v9 = vld [vmem:[%s5377_s28 + $0x88] sm:$0xf] }
 0x158   : > { %2848 = vmatpush.bf16.msrb.mxu1 %v4072_v5  ;;  %v4312_v5 = vor.u32 %v4800_v63, %v4311_v62  ;;  %v3980_v6 = vor.u32 %v4716_v1, %v3979_v0  ;;  %v4116_v14 = vor.u32 %v4748_v3, %v4113_v4  ;;  %v4771_v48 = vld [vmem:[%s5377_s28 + $0x278] sm:$0xf0]  ;;  %v3899_v51 = vld [vmem:[%s5377_s28 + $0x10] sm:$0xf]  ;;  %v4179_v62 = vld [vmem:[%s5377_s28 + $0x240] sm:$0xf] }
 0x159   : > { %v1584_v25 = vadd.f32 %v1583_v15, %v1570_v10  ;;  %2819 = vmatpush.bf16.msra.mxu3 %v4408_v19  ;;  %v1672_v40 = vmax.f32 %v1596_v34, 0.0  ;;  %v4711_v10 = vld [vmem:[%s5377_s28 + $0x98] sm:$0xf0]  ;;  %v4766_v63 = vld [vmem:[%s5377_s28 + $0x250] sm:$0xf0] }
 0x15a   : > { %2886 = vmatpush.bf16.msra.mxu0 %v3996_v24  ;;  %v4196_v24 = vor.u32 %v4768_v8, %v4193_v12  ;;  %v4795_v8 = vld [vmem:[%s5377_s28 + $0x338] sm:$0xf0]  ;;  %v3960_v19 = vor.u32 %v4711_v10, %v3959_v9  ;;  %v4211_v1 = vld [vmem:[%s5377_s28 + $0x288] sm:$0xf] }
 0x15b   : > { %v4743_v15 = vld [vmem:[%s5377_s28 + $0x19c] sm:$0xf]  ;;  %v4292_v18 = vor.u32 %v4795_v8, %v4291_v7  ;;  %v4180_v8 = vor.u32 %v4766_v63, %v4179_v62  ;;  %v4825_v62 = vld [vmem:[%s5377_s28 + $0x428] sm:$0xf0] }
 0x15c   : > { %2849 = vmatpush.bf16.msrb.mxu1 %v4052_v20  ;;  %v4271_v20 = vld [vmem:[%s5377_s28 + $0x300] sm:$0xf] }
 0x15d   : > { %2820 = vmatpush.bf16.msra.mxu3 %v4388_v37  ;;  %v4272_v17 = vor.u32 %v4790_v23, %v4271_v20  ;;  %v4333_v20 = vld [vmem:[%s5377_s28 + $0x38c] sm:$0xf0] }
 0x15e   : > { %2887 = vmatpush.bf16.msra.mxu0 %v3976_v31  ;;  %v1597_v21 = vpop.f32.mrf.mxu2 }
 0x15f   : > { %v1598_v31 = vadd.f32 %v1597_v21, %v1584_v25  ;;  %2850 = vmatmul.bf16.vlgmr.msrb.gmra.mxu1 %v5874_v54  ;;  %v1611_v12 = vpop.f32.mrf.mxu3  ;;  %v4096_v25 = vor.u32 %v4743_v15, %v4093_v16  ;;  %v4761_v15 = vld [vmem:[%s5377_s28 + $0x228] sm:$0xf0] }
 0x160   : > { %2898 = vmatpush.bf16.msra.mxu1 %v4196_v24  ;;  %v3939_v24 = vld [vmem:[%s5377_s28 + $0x60] sm:$0xf] }
 0x161   : > { %v1676_v41 = vmax.f32 %v1598_v31, 0.0  ;;  %2821 = vmatpush.bf16.msra.mxu3 %v4368_v55  ;;  %v3919_v31 = vld [vmem:[%s5377_s28 + $0x38] sm:$0xf] }
 0x162   : > { %2888 = vmatpush.bf16.msra.mxu0 %v3956_v47  ;;  %v4020_v47 = vor.u32 %v4726_v36, %v4019_v35 }
 0x163   : > { %v5944_v50 = vpack.c.bf16 %v1676_v41, %v1672_v40  ;;  %v4733_v40 = vld [vmem:[%s5377_s28 + $0x14c] sm:$0xf]  ;;  %v4053_v41 = vld [vmem:[%s5377_s28 + $0x15c] sm:$0xf0] }
 0x164   : > { %2899 = vmatpush.bf16.msra.mxu1 %v4176_v38  ;;  %v4056_v55 = vor.u32 %v4733_v40, %v4053_v41  ;;  %v4835_v40 = vld [vmem:[%s5377_s28 + $0x478] sm:$0xf0] }
 0x165   : > { %2752 = vmatmul.bf16.vlgmr.msrb.gmra.mxu2 %v5944_v50 }
 0x166   : > { %2889 = vmatpush.bf16.msra.mxu0 %v3936_v61  ;;  %2856 = vmatpush.bf16.msrb.mxu2 %v4352_v46  ;;  %v4000_v61 = vor.u32 %v4721_v53, %v3999_v52  ;;  %v4231_v46 = vld [vmem:[%s5377_s28 + $0x2b0] sm:$0xf]  ;;  %v4696_v52 = vld [vmem:[%s5377_s28 + $0x20] sm:$0xf0] }
 0x168   : > { %2900 = vmatpush.bf16.msra.mxu1 %v4156_v57 }
 0x16a   : > { %2890 = vmatpush.bf16.msra.mxu0 %v3916_v11  ;;  %2857 = vmatpush.bf16.msrb.mxu2 %v4332_v60  ;;  %v559_v11 = vperm.slane %v5764_v42, 3  ;;  %v4706_v42 = vld [vmem:[%s5377_s28 + $0x70] sm:$0xf0]  ;;  %v4232_v60 = vor.u32 %v4780_v49, %v4231_v46  ;;  %v4273_v46 = vld [vmem:[%s5377_s28 + $0x314] sm:$0xf0] }
 0x16b   : > { %v3940_v21 = vor.u32 %v4706_v42, %v3939_v24  ;;  %v4491_v42 = vld [vmem:[%s5377_s28 + $0x4b8] sm:$0xf]  ;;  %v4431_v49 = vld [vmem:[%s5377_s28 + $0x440] sm:$0xf] }
 0x16c   : > { %2901 = vmatpush.bf16.msra.mxu1 %v4136_v2  ;;  %v1610_v34 = vadd.f32 %v1609_v45, %v559_v11  ;;  %v1612_v35 = vadd.f32 %v1611_v12, %v559_v11  ;;  %v3920_v45 = vor.u32 %v4701_v32, %v3919_v31  ;;  %v4775_v2 = vld [vmem:[%s5377_s28 + $0x298] sm:$0xf0]  ;;  %v4511_v11 = vld [vmem:[%s5377_s28 + $0x4e0] sm:$0xf]  ;;  %v4850_v12 = vld [vmem:[%s5377_s28 + $0x4f0] sm:$0xf0] }
 0x16d   : > { %v4212_v10 = vor.u32 %v4775_v2, %v4211_v1  ;;  %v4119_v31 = vld [vmem:[%s5377_s28 + $0x1c8] sm:$0xf]  ;;  %v4751_v32 = vld [vmem:[%s5377_s28 + $0x1d8] sm:$0xf0]  ;;  %v4736_v1 = vld [vmem:[%s5377_s28 + $0x160] sm:$0xf0] }
 0x16e   : > { %2891 = vmatpush.bf16.msra.mxu0 %v3896_v26  ;;  %v1623_v13 = vpop.f32.mrf.mxu0  ;;  %2858 = vmatpush.bf16.msrb.mxu2 %v4312_v5  ;;  %v4738_v26 = vld [vmem:[%s5377_s28 + $0x174] sm:$0xf]  ;;  %v4808_v5 = vld [vmem:[%s5377_s28 + $0x3a4] sm:$0xf] }
 0x16f   : > { %v1637_v22 = vpop.f32.mrf.mxu1  ;;  %v1624_v28 = vadd.f32 %v1623_v13, %v1610_v34  ;;  %v4076_v38 = vor.u32 %v4738_v26, %v4073_v27  ;;  %v4845_v34 = vld [vmem:[%s5377_s28 + $0x4c8] sm:$0xf0]  ;;  %v4139_v26 = vld [vmem:[%s5377_s28 + $0x1f0] sm:$0xf]  ;;  %v4756_v27 = vld [vmem:[%s5377_s28 + $0x200] sm:$0xf0] }
 0x170   : > { %2902 = vmatpush.bf16.msra.mxu1 %v4116_v14  ;;  %v4159_v14 = vld [vmem:[%s5377_s28 + $0x218] sm:$0xf]  ;;  %v4778_v2 = vld [vmem:[%s5377_s28 + $0x2b4] sm:$0xf] }
 0x171   : > { %2892 = vmatmul.bf16.vlgmr.msra.gmra.mxu0 %v5817_v56  ;;  %v1638_v43 = vadd.f32 %v1637_v22, %v1624_v28  ;;  %v4512_v22 = vor.u32 %v4850_v12, %v4511_v11  ;;  %v4160_v24 = vor.u32 %v4761_v15, %v4159_v14  ;;  %v4313_v28 = vld [vmem:[%s5377_s28 + $0x364] sm:$0xf0]  ;;  %v4815_v15 = vld [vmem:[%s5377_s28 + $0x3d8] sm:$0xf0] }
 0x172   : > { %2940 = vmatpush.bf16.msrb.mxu0 %v4040_v29  ;;  %2859 = vmatpush.bf16.msrb.mxu2 %v4292_v18  ;;  %v4251_v29 = vld [vmem:[%s5377_s28 + $0x2d8] sm:$0xf]  ;;  %v4359_v12 = vld [vmem:[%s5377_s28 + $0x3a8] sm:$0xf] }
 0x173   : > { %v4252_v39 = vor.u32 %v4785_v30, %v4251_v29  ;;  %v4471_v29 = vld [vmem:[%s5377_s28 + $0x490] sm:$0xf]  ;;  %v4840_v30 = vld [vmem:[%s5377_s28 + $0x4a0] sm:$0xf0]  ;;  %v4371_v14 = vld [vmem:[%s5377_s28 + $0x3c8] sm:$0xf] }
 0x174   : > { %2903 = vmatpush.bf16.msra.mxu1 %v4096_v25 }
 0x175   : > { %2808 = vmatmul.bf16.vlgmr.msra.gmra.mxu2 %v5944_v50 }
 0x176   : > { %2941 = vmatpush.bf16.msrb.mxu0 %v4020_v47  ;;  %v1651_v33 = vpop.f32.mrf.mxu2  ;;  %v1625_v37 = vpop.f32.mrf.mxu0  ;;  %2860 = vmatpush.bf16.msrb.mxu2 %v4272_v17  ;;  %v4199_v47 = vld [vmem:[%s5377_s28 + $0x268] sm:$0xf]  ;;  %v4492_v17 = vor.u32 %v4845_v34, %v4491_v42  ;;  %v4806_v42 = vld [vmem:[%s5377_s28 + $0x390] sm:$0xf0] }
 0x177   : > { %v1665_v36 = vpop.f32.mrf.mxu3  ;;  %v1626_v44 = vadd.f32 %v1625_v37, %v1612_v35  ;;  %v1652_v53 = vadd.f32 %v1651_v33, %v1638_v43  ;;  %v1639_v57 = vpop.f32.mrf.mxu1  ;;  %v4200_v58 = vor.u32 %v4771_v48, %v4199_v47  ;;  %v4793_v35 = vld [vmem:[%s5377_s28 + $0x32c] sm:$0xf]  ;;  %v4472_v37 = vor.u32 %v4840_v30, %v4471_v29  ;;  %v4099_v43 = vld [vmem:[%s5377_s28 + $0x1a0] sm:$0xf]  ;;  %v4299_v30 = vld [vmem:[%s5377_s28 + $0x330] sm:$0xf] }
 0x178   : > { %2904 = vmatpush.bf16.msra.mxu1 %v4076_v38  ;;  %v4120_v38 = vor.u32 %v4751_v32, %v4119_v31  ;;  %v4833_v32 = vld [vmem:[%s5377_s28 + $0x46c] sm:$0xf] }
 0x179   : > { %v1640_v59 = vadd.f32 %v1639_v57, %v1626_v44  ;;  %v1666_v3 = vadd.f32 %v1665_v36, %v1652_v53  ;;  %v4293_v36 = vld [vmem:[%s5377_s28 + $0x33c] sm:$0xf0]  ;;  %v4746_v44 = vld [vmem:[%s5377_s28 + $0x1b0] sm:$0xf0]  ;;  %v4079_v53 = vld [vmem:[%s5377_s28 + $0x178] sm:$0xf] }
 0x17a   : > { %2942 = vmatpush.bf16.msrb.mxu0 %v4000_v61  ;;  %2861 = vmatpush.bf16.msrb.mxu2 %v4252_v39  ;;  %v3900_v61 = vor.u32 %v4696_v52, %v3899_v51  ;;  %v4451_v39 = vld [vmem:[%s5377_s28 + $0x468] sm:$0xf]  ;;  %v4296_v41 = vor.u32 %v4793_v35, %v4293_v36  ;;  %v4100_v48 = vor.u32 %v4746_v44, %v4099_v43  ;;  %v4830_v51 = vld [vmem:[%s5377_s28 + $0x450] sm:$0xf0]  ;;  %v4783_v57 = vld [vmem:[%s5377_s28 + $0x2dc] sm:$0xf] }
 0x17b   : > { %v1673_v16 = vmax.f32 %v1666_v3, 0.0  ;;  %v4452_v47 = vor.u32 %v4835_v40, %v4451_v39  ;;  %v4233_v3 = vld [vmem:[%s5377_s28 + $0x2c4] sm:$0xf0]  ;;  %v4453_v35 = vld [vmem:[%s5377_s28 + $0x47c] sm:$0xf0] }
 0x17c   : > { %2905 = vmatpush.bf16.msra.mxu1 %v4056_v55  ;;  %v4741_v55 = vld [vmem:[%s5377_s28 + $0x188] sm:$0xf0]  ;;  %v4456_v39 = vor.u32 %v4833_v32, %v4453_v35  ;;  %v4828_v40 = vld [vmem:[%s5377_s28 + $0x444] sm:$0xf]  ;;  %v4259_v44 = vld [vmem:[%s5377_s28 + $0x2e0] sm:$0xf] }
 0x17e   : > { %2943 = vmatpush.bf16.msrb.mxu0 %v3980_v6  ;;  %v1653_v0 = vpop.f32.mrf.mxu2  ;;  %v4353_v6 = vld [vmem:[%s5377_s28 + $0x3b4] sm:$0xf0]  ;;  %2862 = vmatpush.bf16.msrb.mxu2 %v4232_v60  ;;  %v4080_v60 = vor.u32 %v4741_v55, %v4079_v53  ;;  %v4818_v55 = vld [vmem:[%s5377_s28 + $0x3f4] sm:$0xf] }
 0x17f   : > { %v1654_v4 = vadd.f32 %v1653_v0, %v1640_v59  ;;  %v1667_v7 = vpop.f32.mrf.mxu3  ;;  %2906 = vmatmul.bf16.vlgmr.msra.gmra.mxu1 %v5874_v54  ;;  %v4356_v13 = vor.u32 %v4808_v5, %v4353_v6  ;;  %v4432_v59 = vor.u32 %v4830_v51, %v4431_v49  ;;  %v4059_v0 = vld [vmem:[%s5377_s28 + $0x150] sm:$0xf]  ;;  %v4239_v51 = vld [vmem:[%s5377_s28 + $0x2b8] sm:$0xf] }
 0x180   : > { %2954 = vmatpush.bf16.msrb.mxu1 %v4200_v58  ;;  %v4253_v58 = vld [vmem:[%s5377_s28 + $0x2ec] sm:$0xf0]  ;;  %v4060_v5 = vor.u32 %v4736_v1, %v4059_v0  ;;  %v4519_v1 = vld [vmem:[%s5377_s28 + $0x4e8] sm:$0xf] }
 0x181   : > { %v1668_v9 = vadd.f32 %v1667_v7, %v1654_v4  ;;  %v4256_v63 = vor.u32 %v4783_v57, %v4253_v58  ;;  %v4391_v6 = vld [vmem:[%s5377_s28 + $0x3f0] sm:$0xf]  ;;  %v4820_v7 = vld [vmem:[%s5377_s28 + $0x400] sm:$0xf0]  ;;  %v4393_v57 = vld [vmem:[%s5377_s28 + $0x404] sm:$0xf0] }
 0x182   : > { %2944 = vmatpush.bf16.msrb.mxu0 %v3960_v19  ;;  %v4803_v19 = vld [vmem:[%s5377_s28 + $0x37c] sm:$0xf]  ;;  %2863 = vmatpush.bf16.msrb.mxu2 %v4212_v10  ;;  %v4213_v10 = vld [vmem:[%s5377_s28 + $0x29c] sm:$0xf0]  ;;  %v4392_v11 = vor.u32 %v4820_v7, %v4391_v6  ;;  %v4846_v6 = vld [vmem:[%s5377_s28 + $0x4d0] sm:$0xf0] }
 0x183   : > { %v1677_v18 = vmax.f32 %v1668_v9, 0.0  ;;  %v4336_v25 = vor.u32 %v4803_v19, %v4333_v20  ;;  %v4773_v9 = vld [vmem:[%s5377_s28 + $0x28c] sm:$0xf]  ;;  %v4513_v19 = vld [vmem:[%s5377_s28 + $0x4f4] sm:$0xf0] }
 0x184   : > { %2955 = vmatpush.bf16.msrb.mxu1 %v4180_v8  ;;  %v4236_v8 = vor.u32 %v4778_v2, %v4233_v3  ;;  %v4851_v2 = vld [vmem:[%s5377_s28 + $0x4f8] sm:$0xf0] }
 0x185   : > { %v5999_v23 = vpack.c.bf16 %v1677_v18, %v1673_v16  ;;  %2864 = vmatmul.bf16.vlgmr.msrb.gmra.mxu2 %v5944_v50  ;;  %v4216_v16 = vor.u32 %v4773_v9, %v4213_v10  ;;  %v4848_v18 = vld [vmem:[%s5377_s28 + $0x4e4] sm:$0xf]  ;;  %v4841_v9 = vld [vmem:[%s5377_s28 + $0x4a8] sm:$0xf0] }
 0x186   : > { %2945 = vmatpush.bf16.msrb.mxu0 %v3940_v21  ;;  %2912 = vmatpush.bf16.msra.mxu2 %v4356_v13  ;;  %v4140_v21 = vor.u32 %v4756_v27, %v4139_v26  ;;  %v4811_v13 = vld [vmem:[%s5377_s28 + $0x3b8] sm:$0xf0]  ;;  %v4516_v34 = vor.u32 %v4848_v18, %v4513_v19  ;;  %v4493_v26 = vld [vmem:[%s5377_s28 + $0x4cc] sm:$0xf0]  ;;  %v4826_v18 = vld [vmem:[%s5377_s28 + $0x430] sm:$0xf0] }
 0x187   : > { %2766 = vmatmul.bf16.vlgmr.msrb.gmra.mxu3 %v5999_v23  ;;  %v4360_v20 = vor.u32 %v4811_v13, %v4359_v12  ;;  %v4836_v12 = vld [vmem:[%s5377_s28 + $0x480] sm:$0xf0] }
 0x188   : > { %2870 = vmatpush.bf16.msrb.mxu3 %v4512_v22  ;;  %2956 = vmatpush.bf16.msrb.mxu1 %v4160_v24  ;;  %v4372_v22 = vor.u32 %v4815_v15, %v4371_v14  ;;  %v4339_v24 = vld [vmem:[%s5377_s28 + $0x380] sm:$0xf]  ;;  %v4439_v14 = vld [vmem:[%s5377_s28 + $0x448] sm:$0xf] }
 0x189   : > { %v4340_v27 = vor.u32 %v4806_v42, %v4339_v24  ;;  %v4379_v42 = vld [vmem:[%s5377_s28 + $0x3d0] sm:$0xf] }
 0x18a   : > { %2946 = vmatpush.bf16.msrb.mxu0 %v3920_v45  ;;  %2913 = vmatpush.bf16.msra.mxu2 %v4336_v25  ;;  %v4788_v45 = vld [vmem:[%s5377_s28 + $0x304] sm:$0xf]  ;;  %v4843_v25 = vld [vmem:[%s5377_s28 + $0x4bc] sm:$0xf] }
 0x18b   : > { %v4276_v52 = vor.u32 %v4788_v45, %v4273_v46  ;;  %v4786_v45 = vld [vmem:[%s5377_s28 + $0x2f0] sm:$0xf0] }
 0x18c   : > { %2871 = vmatpush.bf16.msrb.mxu3 %v4492_v17  ;;  %2957 = vmatpush.bf16.msrb.mxu1 %v4140_v21  ;;  %v4838_v17 = vld [vmem:[%s5377_s28 + $0x494] sm:$0xf]  ;;  %v4473_v21 = vld [vmem:[%s5377_s28 + $0x4a4] sm:$0xf0]  ;;  %v4260_v49 = vor.u32 %v4786_v45, %v4259_v44 }
 0x18d   : > { %v4476_v31 = vor.u32 %v4838_v17, %v4473_v21 }
 0x18e   : > { %2947 = vmatpush.bf16.msrb.mxu0 %v3900_v61  ;;  %v4411_v61 = vld [vmem:[%s5377_s28 + $0x418] sm:$0xf] }
 0x18f   : > { %v4412_v4 = vor.u32 %v4825_v62, %v4411_v61  ;;  %v4396_v61 = vor.u32 %v4818_v55, %v4393_v57  ;;  %v4813_v62 = vld [vmem:[%s5377_s28 + $0x3cc] sm:$0xf] }
 0x190   : > { %2872 = vmatpush.bf16.msrb.mxu3 %v4472_v37  ;;  %2958 = vmatpush.bf16.msrb.mxu1 %v4120_v38  ;;  %v4279_v37 = vld [vmem:[%s5377_s28 + $0x308] sm:$0xf]  ;;  %v4791_v38 = vld [vmem:[%s5377_s28 + $0x318] sm:$0xf0] }
 0x191   : > { %2948 = vmatmul.bf16.vlgmr.msrb.gmra.mxu0 %v5817_v56  ;;  %v4798_v56 = vld [vmem:[%s5377_s28 + $0x354] sm:$0xf]  ;;  %v4280_v43 = vor.u32 %v4791_v38, %v4279_v37 }
 0x192   : > { %v4316_v33 = vor.u32 %v4798_v56, %v4313_v28  ;;  %v4319_v56 = vld [vmem:[%s5377_s28 + $0x358] sm:$0xf]  ;;  %v4801_v28 = vld [vmem:[%s5377_s28 + $0x368] sm:$0xf0] }
 0x193   : > { %v4320_v29 = vor.u32 %v4801_v28, %v4319_v56 }
 0x194   : > { %2914 = vmatpush.bf16.msra.mxu2 %v4316_v33  ;;  %2873 = vmatpush.bf16.msrb.mxu3 %v4452_v47  ;;  %v4796_v33 = vld [vmem:[%s5377_s28 + $0x340] sm:$0xf0]  ;;  %v4823_v47 = vld [vmem:[%s5377_s28 + $0x41c] sm:$0xf] }
 0x195   : > { %2959 = vmatpush.bf16.msrb.mxu1 %v4100_v48  ;;  %v4300_v36 = vor.u32 %v4796_v33, %v4299_v30  ;;  %v4413_v48 = vld [vmem:[%s5377_s28 + $0x42c] sm:$0xf0] }
 0x196   : > { %v4416_v53 = vor.u32 %v4823_v47, %v4413_v48  ;;  %v1678_v30 = vld [vmem:[#allocation2 + $0x30] sm:$0xff]  ;;  %v1679_v48 = vld [vmem:[#allocation2] sm:$0xff] }
 0x197   : > { %2822 = vmatmul.bf16.vlgmr.msra.gmra.mxu3 %v5999_v23 }
 0x198   : > { %2915 = vmatpush.bf16.msra.mxu2 %v4296_v41  ;;  %2874 = vmatpush.bf16.msrb.mxu3 %v4432_v59  ;;  %v4433_v41 = vld [vmem:[%s5377_s28 + $0x454] sm:$0xf0]  ;;  %v4219_v59 = vld [vmem:[%s5377_s28 + $0x290] sm:$0xf] }
 0x199   : > { %2960 = vmatpush.bf16.msrb.mxu1 %v4080_v60  ;;  %v4436_v46 = vor.u32 %v4828_v40, %v4433_v41  ;;  %v4776_v60 = vld [vmem:[%s5377_s28 + $0x2a0] sm:$0xf0]  ;;  %v1683_v40 = vld [vmem:[#allocation2 + $0x28] sm:$0xff] }
 0x19a   : > { %v4220_v0 = vor.u32 %v4776_v60, %v4219_v59  ;;  %v2725_v56 = vpop.f32.mrf.mxu0  ;;  %v1684_v59 = vld [vmem:[#allocation2 + $0x8] sm:$0xff] }
 0x19c   : > { %2916 = vmatpush.bf16.msra.mxu2 %v4276_v52  ;;  %2875 = vmatpush.bf16.msrb.mxu3 %v4412_v4  ;;  %v4781_v52 = vld [vmem:[%s5377_s28 + $0x2c8] sm:$0xf0]  ;;  %v4520_v4 = vor.u32 %v4851_v2, %v4519_v1 }
 0x19d   : > { %2961 = vmatpush.bf16.msrb.mxu1 %v4060_v5  ;;  %v4240_v58 = vor.u32 %v4781_v52, %v4239_v51  ;;  %v4499_v5 = vld [vmem:[%s5377_s28 + $0x4c0] sm:$0xf] }
 0x19e   : > { %v4500_v7 = vor.u32 %v4846_v6, %v4499_v5 }
 0x1a0   : > { %2917 = vmatpush.bf16.msra.mxu2 %v4256_v63  ;;  %2876 = vmatpush.bf16.msrb.mxu3 %v4392_v11  ;;  %v4373_v63 = vld [vmem:[%s5377_s28 + $0x3dc] sm:$0xf0]  ;;  %v4459_v11 = vld [vmem:[%s5377_s28 + $0x470] sm:$0xf] }
 0x1a1   : > { %2962 = vmatmul.bf16.vlgmr.msrb.gmra.mxu1 %v5874_v54  ;;  %v4496_v54 = vor.u32 %v4843_v25, %v4493_v26  ;;  %v4376_v3 = vor.u32 %v4813_v62, %v4373_v63  ;;  %v4460_v13 = vor.u32 %v4836_v12, %v4459_v11  ;;  %v1685_v12 = vld [vmem:[#allocation2 + $0x20] sm:$0xff] }
 0x1a2   : > { %v2727_v21 = vpop.f32.mrf.mxu0 }
 0x1a4   : > { %2918 = vmatpush.bf16.msra.mxu2 %v4236_v8  ;;  %2877 = vmatpush.bf16.msrb.mxu3 %v4372_v22  ;;  %v4479_v8 = vld [vmem:[%s5377_s28 + $0x498] sm:$0xf]  ;;  %v4821_v22 = vld [vmem:[%s5377_s28 + $0x408] sm:$0xf0] }
 0x1a5   : > { %v4480_v10 = vor.u32 %v4841_v9, %v4479_v8 }
 0x1a7   : > { %2878 = vmatmul.bf16.vlgmr.msrb.gmra.mxu3 %v5999_v23 }
 0x1a8   : > { %2919 = vmatpush.bf16.msra.mxu2 %v4216_v16  ;;  %2926 = vmatpush.bf16.msra.mxu3 %v4516_v34  ;;  %v4419_v16 = vld [vmem:[%s5377_s28 + $0x420] sm:$0xf]  ;;  %v4816_v34 = vld [vmem:[%s5377_s28 + $0x3e0] sm:$0xf0] }
 0x1a9   : > { %v4420_v19 = vor.u32 %v4826_v18, %v4419_v16  ;;  %v4380_v25 = vor.u32 %v4816_v34, %v4379_v42 }
 0x1ab   : > { %2920 = vmatmul.bf16.vlgmr.msra.gmra.mxu2 %v5944_v50 }
 0x1ac   : > { %2968 = vmatpush.bf16.msrb.mxu2 %v4360_v20  ;;  %2927 = vmatpush.bf16.msra.mxu3 %v4496_v54  ;;  %v4399_v20 = vld [vmem:[%s5377_s28 + $0x3f8] sm:$0xf] }
 0x1ad   : > { %v4400_v24 = vor.u32 %v4821_v22, %v4399_v20  ;;  %v1681_v22 = vld [vmem:[#allocation2 + $0x10] sm:$0xff] }
 0x1b0   : > { %2969 = vmatpush.bf16.msrb.mxu2 %v4340_v27  ;;  %2928 = vmatpush.bf16.msra.mxu3 %v4476_v31 }
 0x1b4   : > { %2970 = vmatpush.bf16.msrb.mxu2 %v4320_v29  ;;  %2929 = vmatpush.bf16.msra.mxu3 %v4456_v39  ;;  %v2781_v39 = vpop.f32.mrf.mxu0 }
 0x1b8   : > { %2971 = vmatpush.bf16.msrb.mxu2 %v4300_v36  ;;  %2930 = vmatpush.bf16.msra.mxu3 %v4436_v46 }
 0x1bc   : > { %2972 = vmatpush.bf16.msrb.mxu2 %v4280_v43  ;;  %2931 = vmatpush.bf16.msra.mxu3 %v4416_v53  ;;  %v2739_v26 = vpop.f32.mrf.mxu1  ;;  %v2783_v52 = vpop.f32.mrf.mxu0 }
 0x1bd   : > { %v2740_v17 = vadd.f32 %v2739_v26, %v2725_v56 }
 0x1c0   : > { %2973 = vmatpush.bf16.msrb.mxu2 %v4260_v49  ;;  %2932 = vmatpush.bf16.msra.mxu3 %v4396_v61 }
 0x1c4   : > { %2974 = vmatpush.bf16.msrb.mxu2 %v4240_v58  ;;  %2933 = vmatpush.bf16.msra.mxu3 %v4376_v3  ;;  %v2741_v28 = vpop.f32.mrf.mxu1  ;;  %v1680_v3 = vld [vmem:[#allocation2 + $0x18] sm:$0xff] }
 0x1c5   : > { %v2742_v36 = vadd.f32 %v2741_v28, %v2727_v21 }
 0x1c7   : > { %2934 = vmatmul.bf16.vlgmr.msra.gmra.mxu3 %v5999_v23 }
 0x1c8   : > { %2975 = vmatpush.bf16.msrb.mxu2 %v4220_v0  ;;  %2982 = vmatpush.bf16.msrb.mxu3 %v4520_v4 }
 0x1cb   : > { %2976 = vmatmul.bf16.vlgmr.msrb.gmra.mxu2 %v5944_v50  ;;  %v4831_v50 = vld [vmem:[%s5377_s28 + $0x458] sm:$0xf0] }
 0x1cc   : > { %2983 = vmatpush.bf16.msrb.mxu3 %v4500_v7  ;;  %v4440_v15 = vor.u32 %v4831_v50, %v4439_v14  ;;  %v2795_v35 = vpop.f32.mrf.mxu1 }
 0x1cd   : > { %v2796_v44 = vadd.f32 %v2795_v35, %v2781_v39 }
 0x1ce   : > { %v2837_v62 = vpop.f32.mrf.mxu0 }
 0x1d0   : > { %2984 = vmatpush.bf16.msrb.mxu3 %v4480_v10 }
 0x1d4   : > { %2985 = vmatpush.bf16.msrb.mxu3 %v4460_v13  ;;  %v2797_v45 = vpop.f32.mrf.mxu1 }
 0x1d5   : > { %v2798_v55 = vadd.f32 %v2797_v45, %v2783_v52  ;;  %v1687_v45 = vld [vmem:[#allocation2 + $0x38] sm:$0xff] }
 0x1d6   : > { %v2839_v8 = vpop.f32.mrf.mxu0 }
 0x1d8   : > { %2986 = vmatpush.bf16.msrb.mxu3 %v4440_v15 }
 0x1dc   : > { %2987 = vmatpush.bf16.msrb.mxu3 %v4420_v19  ;;  %v2851_v58 = vpop.f32.mrf.mxu1 }
 0x1dd   : > { %v2852_v1 = vadd.f32 %v2851_v58, %v2837_v62 }
 0x1e0   : > { %2988 = vmatpush.bf16.msrb.mxu3 %v4400_v24 }
 0x1e4   : > { %2989 = vmatpush.bf16.msrb.mxu3 %v4380_v25  ;;  %v2853_v6 = vpop.f32.mrf.mxu1 }
 0x1e5   : > { %v2854_v10 = vadd.f32 %v2853_v6, %v2839_v8 }
 0x1e7   : > { %2990 = vmatmul.bf16.vlgmr.msrb.gmra.mxu3 %v5999_v23 }
 0x1e8   : > { %v2753_v27 = vpop.f32.mrf.mxu2 }
 0x1e9   : > { %v2754_v29 = vadd.f32 %v2753_v27, %v2740_v17 }
 0x1ee   : > { %v2893_v16 = vpop.f32.mrf.mxu0 }
 0x1f0   : > { %v2755_v54 = vpop.f32.mrf.mxu2 }
 0x1f1   : > { %v2756_v38 = vadd.f32 %v2755_v54, %v2742_v36  ;;  %v1686_v54 = vld [vmem:[#allocation2 + $0x40] sm:$0xff]  ;;  %v1682_v36 = vld [vmem:[#allocation2 + $0x48] sm:$0xff] }
 0x1f6   : > { %v2895_v26 = vpop.f32.mrf.mxu0 }
 0x1f8   : > { %v2809_v37 = vpop.f32.mrf.mxu2 }
 0x1f9   : > { %v2810_v46 = vadd.f32 %v2809_v37, %v2796_v44 }
 0x1fc   : > { %v2907_v15 = vpop.f32.mrf.mxu1 }
 0x1fd   : > { %v2908_v19 = vadd.f32 %v2907_v15, %v2893_v16 }
 0x200   : > { %v2811_v47 = vpop.f32.mrf.mxu2 }
 0x201   : > { %v2812_v57 = vadd.f32 %v2811_v47, %v2798_v55 }
 0x204   : > { %v2909_v34 = vpop.f32.mrf.mxu1 }
 0x205   : > { %v2910_v56 = vadd.f32 %v2909_v34, %v2895_v26 }
 0x208   : > { %v2865_v63 = vpop.f32.mrf.mxu2 }
 0x209   : > { %v2866_v2 = vadd.f32 %v2865_v63, %v2852_v1 }
 0x20a   : > { %v2767_v33 = vpop.f32.mrf.mxu3 }
 0x20b   : > { %v2768_v31 = vadd.f32 %v2767_v33, %v2754_v29 }
 0x20d   : > { %v2996_v32 = vadd.f32 %v2768_v31, %v1678_v30 }
 0x20e   : > { %v2949_v33 = vpop.f32.mrf.mxu0 }
 0x20f   : > { %3006 = vst [vmem:[#allocation2 + $0x30] sm:$0xff] %v2996_v32 }
 0x210   : > { %v2867_v9 = vpop.f32.mrf.mxu2 }
 0x211   : > { %v2868_v11 = vadd.f32 %v2867_v9, %v2854_v10 }
 0x212   : > { %v2769_v23 = vpop.f32.mrf.mxu3 }
 0x213   : > { %v2770_v41 = vadd.f32 %v2769_v23, %v2756_v38 }
 0x215   : > { %v3001_v43 = vadd.f32 %v2770_v41, %v1683_v40 }
 0x216   : > { %v2951_v23 = vpop.f32.mrf.mxu0 }
 0x217   : > { %3011 = vst [vmem:[#allocation2 + $0x28] sm:$0xff] %v3001_v43 }
 0x21a   : > { %v2823_v49 = vpop.f32.mrf.mxu3 }
 0x21b   : > { %v2824_v51 = vadd.f32 %v2823_v49, %v2810_v46 }
 0x21d   : > { %v2997_v53 = vadd.f32 %v2824_v51, %v1679_v48 }
 0x21e   : > { %v2963_v30 = vpop.f32.mrf.mxu1 }
 0x21f   : > { %3007 = vst [vmem:[#allocation2] sm:$0xff] %v2997_v53  ;;  %v2964_v32 = vadd.f32 %v2963_v30, %v2949_v33 }
 0x222   : > { %v2825_v60 = vpop.f32.mrf.mxu3 }
 0x223   : > { %v2826_v61 = vadd.f32 %v2825_v60, %v2812_v57 }
 0x225   : > { %v3002_v0 = vadd.f32 %v2826_v61, %v1684_v59 }
 0x226   : > { %v2965_v39 = vpop.f32.mrf.mxu1 }
 0x227   : > { %3012 = vst [vmem:[#allocation2 + $0x8] sm:$0xff] %v3002_v0  ;;  %v2966_v43 = vadd.f32 %v2965_v39, %v2951_v23 }
 0x22a   : > { %v2879_v4 = vpop.f32.mrf.mxu3 }
 0x22b   : > { %v2880_v5 = vadd.f32 %v2879_v4, %v2866_v2 }
 0x22d   : > { %v2998_v7 = vadd.f32 %v2880_v5, %v1680_v3 }
 0x22e   : > { %v2921_v18 = vpop.f32.mrf.mxu2 }
 0x22f   : > { %3008 = vst [vmem:[#allocation2 + $0x18] sm:$0xff] %v2998_v7  ;;  %v2922_v20 = vadd.f32 %v2921_v18, %v2908_v19 }
 0x232   : > { %v2881_v13 = vpop.f32.mrf.mxu3 }
 0x233   : > { %v2882_v14 = vadd.f32 %v2881_v13, %v2868_v11 }
 0x235   : > { %v3003_v50 = vadd.f32 %v2882_v14, %v1685_v12 }
 0x236   : > { %v2923_v27 = vpop.f32.mrf.mxu2 }
 0x237   : > { %3013 = vst [vmem:[#allocation2 + $0x20] sm:$0xff] %v3003_v50  ;;  %v2924_v28 = vadd.f32 %v2923_v27, %v2910_v56 }
 0x24a   : > { %v2935_v24 = vpop.f32.mrf.mxu3 }
 0x24b   : > { %v2936_v42 = vadd.f32 %v2935_v24, %v2922_v20 }
 0x24d   : > { %v2999_v25 = vadd.f32 %v2936_v42, %v1681_v22 }
 0x24e   : > { %v2977_v31 = vpop.f32.mrf.mxu2 }
 0x24f   : > { %3009 = vst [vmem:[#allocation2 + $0x10] sm:$0xff] %v2999_v25  ;;  %v2978_v35 = vadd.f32 %v2977_v31, %v2964_v32 }
 0x252   : > { %v2937_v17 = vpop.f32.mrf.mxu3 }
 0x253   : > { %v2938_v21 = vadd.f32 %v2937_v17, %v2924_v28 }
 0x255   : > { %v3004_v29 = vadd.f32 %v2938_v21, %v1686_v54 }
 0x256   : > { %v2979_v41 = vpop.f32.mrf.mxu2 }
 0x257   : > { %3014 = vst [vmem:[#allocation2 + $0x40] sm:$0xff] %v3004_v29  ;;  %v2980_v44 = vadd.f32 %v2979_v41, %v2966_v43 }
 0x26a   : > { %v2991_v37 = vpop.f32.mrf.mxu3 }
 0x26b   : > { %v2992_v38 = vadd.f32 %v2991_v37, %v2978_v35 }
 0x26d   : > { %v3000_v40 = vadd.f32 %v2992_v38, %v1682_v36 }
 0x26f   : > { %3010 = vst [vmem:[#allocation2 + $0x48] sm:$0xff] %v3000_v40 }
 0x272   : > { %v2993_v46 = vpop.f32.mrf.mxu3 }
 0x273   : > { %v2994_v47 = vadd.f32 %v2993_v46, %v2980_v44  ;;  %3019 = sbr.rel (%p4521_p2) target bundleno = 647 (0x287), region = 68 }
 0x275   : > { %v3005_v48 = vadd.f32 %v2994_v47, %v1687_v45 }
 0x277   : > { %3015 = vst [vmem:[#allocation2 + $0x38] sm:$0xff] %v3005_v48 }
 0x278   : > { %v3020_v49 = vld [vmem:[#allocation2 + $0x30] sm:$0xff]  ;;  %v3030_v51 = vld [vmem:[#allocation11] sm:$0x1f]  ;;  %v3022_v57 = vld [vmem:[#allocation2 + $0x18] sm:$0xff] }
 0x279   : > { %v3021_v52 = vld [vmem:[#allocation2] sm:$0xff]  ;;  %v3032_v53 = vperm.slane %v3030_v51, 0  ;;  %v3033_v55 = vperm.slane %v3030_v51, 1  ;;  %v3034_v58 = vperm.slane %v3030_v51, 2  ;;  %v3023_v59 = vld [vmem:[#allocation2 + $0x10] sm:$0xff]  ;;  %v3035_v60 = vperm.slane %v3030_v51, 3 }
 0x27a   : > { %v3024_v61 = vld [vmem:[#allocation2 + $0x48] sm:$0xff]  ;;  %v3036_v62 = vperm.slane %v3030_v51, 4  ;;  %v3027_v6 = vld [vmem:[#allocation2 + $0x20] sm:$0xff] }
 0x27b   : > { %v3042_v63 = vadd.f32 %v3032_v53, %v3020_v49  ;;  %v3043_v0 = vadd.f32 %v3033_v55, %v3021_v52  ;;  %v3044_v1 = vadd.f32 %v3034_v58, %v3022_v57  ;;  %v3025_v2 = vld [vmem:[#allocation2 + $0x28] sm:$0xff]  ;;  %v3045_v3 = vadd.f32 %v3035_v60, %v3023_v59  ;;  %v3028_v8 = vld [vmem:[#allocation2 + $0x40] sm:$0xff] }
 0x27c   : > { %v3026_v4 = vld [vmem:[#allocation2 + $0x8] sm:$0xff]  ;;  %v3046_v5 = vadd.f32 %v3036_v62, %v3024_v61  ;;  %v3047_v7 = vadd.f32 %v3032_v53, %v3025_v2  ;;  %v3049_v11 = vadd.f32 %v3034_v58, %v3027_v6  ;;  %v3050_v12 = vadd.f32 %v3035_v60, %v3028_v8 }
 0x27d   : > { %3052 = vst [vmem:[#allocation12] sm:$0xff] %v3042_v63  ;;  %v3048_v9 = vadd.f32 %v3033_v55, %v3026_v4 }
 0x27e   : > { %3053 = vst [vmem:[#allocation12 + $0x8] sm:$0xff] %v3043_v0  ;;  %v3029_v10 = vld [vmem:[#allocation2 + $0x38] sm:$0xff] }
 0x27f   : > { %3054 = vst [vmem:[#allocation12 + $0x10] sm:$0xff] %v3044_v1  ;;  %v3051_v13 = vadd.f32 %v3036_v62, %v3029_v10 }
 0x280   : > { %3055 = vst [vmem:[#allocation12 + $0x18] sm:$0xff] %v3045_v3 }
 0x281   : > { %3056 = vst [vmem:[#allocation12 + $0x20] sm:$0xff] %v3046_v5 }
 0x282   : > { %3057 = vst [vmem:[#allocation12 + $0x28] sm:$0xff] %v3047_v7 }
 0x283   : > { %3058 = vst [vmem:[#allocation12 + $0x30] sm:$0xff] %v3048_v9 }
 0x284   : > { %3059 = vst [vmem:[#allocation12 + $0x38] sm:$0xff] %v3049_v11 }
 0x285   : > { %3060 = vst [vmem:[#allocation12 + $0x40] sm:$0xff] %v3050_v12 }
 0x286   : > { %3061 = vst [vmem:[#allocation12 + $0x48] sm:$0xff] %v3051_v13 }
 0x287 PF: > { %p4896_p3 = scmp.eq.s32.totalorder %s5273_s24, 4  ;;  %s6138_s11 = sld [smem:[#allocation22_spill]] }
 0x288   : > { %s5211_s7 = smov [#allocation12]   ;;  %s5212_s13 = smov 640  }
 0x289   : > { %s3071_s15 = sshll.u32 %s5211_s7, 4  ;;  %s5213_s17 = smov 40   ;;  %s3072_s15 = int_to_ptr.vmem [resolvable:$true] %s3071_s15 }
 0x28d   : > { %s3073_s29 = sshll.u32 %s6138_s11, 4  ;;  %s3074_s29 = int_to_ptr.hbm [resolvable:$true] %s3073_s29 }
 0x28e   : > { %4871 = dma.vmem_to_hbm [thread:$0]  (%p4896_p3), %s3072_s15, 1280, %s3074_s29, [#allocation5], %s5212_s13, %s5212_s13, %s5213_s17  }
 0x28f   : > { %5176 = dma.done.wait (%p4896_p3), [#allocation5], 1280  }
 0x290   : > { %5178 = vsyncadd (%p4896_p3), [#allocation5], 4294966016 }
 0x291 PF: > { %s23_s23 = sadd.s32 1, %s5201_s23   ;;  %s6139_s24 = sld [smem:[#allocation19_spill]] }
 0x292   : > { %p20_p4 = scmp.ge.s32.totalorder %s23_s23, 7   ;;  %s6140_s25 = sld [smem:[#allocation18_spill]] }
 0x293   : > { %s6141_s18 = smov %s5185_s19  ;;  %s6142_s19 = smov %s5189_s20 }
 0x294   : > { %s6144_s21 = smov %s5197_s22  ;;  %22 = sbr.rel (!%p20_p4) target bundleno = 12 (0xc), region = 120 }
 0x297   : > { %s6143_s20 = smov %s6139_s24 }
 0x298   : > { %s6145_s22 = smov %s6140_s25 }
 0x299   :  { %3090 = vsyncpa [#allocation4], 1 }
 0x29a   :  { %3092 = vsyncpa [#allocation4 + $0x1], 1 }
 0x29b   :  { %3093 = vsyncpa [#allocation7], 1 }
 0x29c   :  { %3095 = vsyncpa [#allocation7 + $0x1], 1 }
 0x29d   :  { %3096 = vsyncpa [#allocation10], 1 }
 0x29e   :  { %3098 = vsyncpa [#allocation10 + $0x1], 1 }
 0x29f   :  { %3099 = vsyncpa [#allocation5], 1 }
 0x2a0   :  { %3101 = vsyncpa [#allocation5 + $0x1], 1 }

</bundles_post_ra>
